<compile_context>
chip_gen: v6e
topology: v6e:2x2x1
jax: 0.10.0
libtpu: 0.0.40
codegen_flags: <defaults>
</compile_context>

<pallas_src>
import jax
import jax.numpy as jnp
from jax.experimental import pallas as pl
from jax.experimental.pallas import tpu as pltpu

DIM_OUT = 47
LAYER_DIMS = [784, 170, 130, 100, 70, DIM_OUT]
# Lane-dense (multiple-of-128) padded feature sizes used INSIDE the kernel for
# the MXU matmuls. The input dim (784) is only ever a contraction dim.
PAD_DIMS = [784, 256, 256, 128, 128, 128]
BETA = 10.0
SOFTPLUS_THRESHOLD = 20.0  # torch.nn.Softplus default threshold (on beta*x)

_ALIGN = 16  # sublane alignment that is safe for both f32 (8) and bf16 (16)


def _round_up(x, m):
    return (x + m - 1) // m * m


def _softplus_beta(z):
    """PyTorch Softplus(beta=10): (1/beta)*log(1+exp(beta*z)), linear past threshold.
    beta*z is clamped before exp so no inf intermediates are produced."""
    bz = BETA * z
    bz_c = jnp.minimum(bz, SOFTPLUS_THRESHOLD)
    soft = jnp.log1p(jnp.exp(bz_c)) * (1.0 / BETA)
    return jnp.where(bz > SOFTPLUS_THRESHOLD, z, soft)


def _mlp_kernel(x_ref, w1_ref, w2_ref, w3_ref, w4_ref, w5_ref,
                y1_ref, y2_ref, y3_ref, y4_ref, y5_ref):
    cdt = w1_ref.dtype  # MXU compute dtype (bf16 by default)
    d1, d2, d3, d4, d5 = LAYER_DIMS[1:]

    x = x_ref[...].astype(cdt)

    # Layer 1: f32 accumulate + softplus, single cast reused for store + next LHS.
    a1 = _softplus_beta(
        jnp.dot(x, w1_ref[...], preferred_element_type=jnp.float32)).astype(cdt)
    y1_ref[...] = a1[:, :d1].astype(y1_ref.dtype)

    a2 = _softplus_beta(
        jnp.dot(a1, w2_ref[...], preferred_element_type=jnp.float32)).astype(cdt)
    y2_ref[...] = a2[:, :d2].astype(y2_ref.dtype)

    a3 = _softplus_beta(
        jnp.dot(a2, w3_ref[...], preferred_element_type=jnp.float32)).astype(cdt)
    y3_ref[...] = a3[:, :d3].astype(y3_ref.dtype)

    a4 = _softplus_beta(
        jnp.dot(a3, w4_ref[...], preferred_element_type=jnp.float32)).astype(cdt)
    y4_ref[...] = a4[:, :d4].astype(y4_ref.dtype)

    h5 = jnp.dot(a4, w5_ref[...], preferred_element_type=jnp.float32)
    y5_ref[...] = h5[:, :d5].astype(y5_ref.dtype)


def pack_weights(weights, compute_dtype=jnp.bfloat16):
    """One-time preprocessing (NOT in the per-step hot path).

    Takes PyTorch-layout (out, in) weights, transposes to (in, out), zero-pads
    both dims to the kernel's lane-dense padded sizes, and casts to the MXU
    compute dtype. Zero rows in layer i+1 guarantee padded activation columns
    of layer i (softplus(0) != 0) contribute nothing.
    """
    packed = []
    for i, w in enumerate(weights):
        out_d, in_d = w.shape
        assert (in_d, out_d) == (LAYER_DIMS[i], LAYER_DIMS[i + 1])
        in_p, out_p = PAD_DIMS[i], PAD_DIMS[i + 1]
        wt = jnp.zeros((in_p, out_p), compute_dtype)
        wt = wt.at[:in_d, :out_d].set(jnp.transpose(w).astype(compute_dtype))
        packed.append(wt)
    return packed


def _pick_batch_tile(b_aligned, batch_tile, min_steps):
    """Pick a sublane-aligned batch tile.

    Targets at least `min_steps` grid steps (so the "parallel" batch axis can
    shard across v7x's two TensorCores and pipeline input DMAs), capped at
    `batch_tile`, preferring a tile that divides the aligned batch so no
    jnp.pad copy of x / batch slice of outputs is needed.
    """
    cap = min(batch_tile,
              max(_ALIGN, _round_up(-(-b_aligned // min_steps), _ALIGN)))
    cap = _round_up(cap, _ALIGN)
    for tb in range(cap, _ALIGN - 1, -_ALIGN):
        if b_aligned % tb == 0:
            return tb
    return cap


def rosenbaum_forward(x, packed_weights, *, batch_tile=512, min_steps=4,
                      act_dtype=jnp.bfloat16):
    """x: (B, 1, 784) float32. packed_weights: output of pack_weights().

    Returns ((y0, y1, y2, y3, y4), y5) matching the PyTorch module.
    y0, y5 are float32; y1..y4 are `act_dtype` (bf16 by default — they are
    bf16-derived values either way since the matmul chain runs in bf16).
    """
    y0 = jnp.squeeze(x, axis=1)                       # (B, 784) == x.squeeze(1)
    B = y0.shape[0]

    B_aligned = _round_up(B, _ALIGN)
    TB = _pick_batch_tile(B_aligned, batch_tile, min_steps)
    Bp = _round_up(B, TB)
    # TODO(synk): for B not a multiple of TB this pad/slice pair costs one
    # extra HBM pass over x/outputs; callers with ragged batches should round
    # their batch to a multiple of 16.
    x_in = y0 if Bp == B else jnp.pad(y0, ((0, Bp - B), (0, 0)))

    grid = (Bp // TB,)

    x_spec = pl.BlockSpec((TB, LAYER_DIMS[0]), lambda i: (i, 0))
    # Weights: full-array blocks, constant index_map -> stay VMEM-resident
    # across the batch grid (no per-step re-DMA).
    w_specs = [pl.BlockSpec(w.shape, lambda i: (0, 0)) for w in packed_weights]

    out_dtypes = [act_dtype, act_dtype, act_dtype, act_dtype, jnp.float32]
    out_specs = tuple(
        pl.BlockSpec((TB, LAYER_DIMS[k + 1]), lambda i: (i, 0))
        for k in range(5))
    out_shapes = tuple(
        jax.ShapeDtypeStruct((Bp, LAYER_DIMS[k + 1]), out_dtypes[k])
        for k in range(5))

    y1, y2, y3, y4, y5 = pl.pallas_call(
        _mlp_kernel,
        out_shape=out_shapes,
        grid=grid,
        in_specs=[x_spec] + w_specs,
        out_specs=out_specs,
        compiler_params=pltpu.CompilerParams(
            dimension_semantics=("parallel",)),  # shards batch across v7x TCs
    )(x_in, *packed_weights)

    if Bp != B:
        y1, y2, y3, y4, y5 = (y[:B] for y in (y1, y2, y3, y4, y5))
    return (y0, y1, y2, y3, y4), y5


def init_params(key, number_of_chemicals=1):
    """Deterministic init. Linear layers use U(-1/sqrt(fan_in), 1/sqrt(fan_in))
    like PyTorch's default; chemicals are zeros (as in the module)."""
    keys = jax.random.split(key, 10)
    fwd_weights = []
    fb_weights = []
    for i in range(5):
        fan_in, fan_out = LAYER_DIMS[i], LAYER_DIMS[i + 1]
        bound = 1.0 / jnp.sqrt(jnp.float32(fan_in))
        fwd_weights.append(
            jax.random.uniform(keys[i], (fan_out, fan_in), jnp.float32,
                               minval=-bound, maxval=bound))
        fb_weights.append(
            jax.random.uniform(keys[5 + i], (fan_out, fan_in), jnp.float32,
                               minval=-bound, maxval=bound))
    chemicals = [
        jnp.zeros((number_of_chemicals, LAYER_DIMS[i + 1], LAYER_DIMS[i]),
                  jnp.float32)
        for i in range(5)
    ]
    # TODO(synk): feedback layers and chemicals are unused in forward(); kept
    # for parameter-shape parity only.
    return fwd_weights, fb_weights, chemicals


def reference_forward(x, weights):
    """Pure-JAX f32 reference mirroring the PyTorch forward exactly."""
    y0 = jnp.squeeze(x, axis=1)
    a = y0
    acts = [y0]
    for i, w in enumerate(weights):
        h = a @ w.T
        if i < 4:
            a = _softplus_beta(h)
            acts.append(a)
        else:
            y5 = h
    return tuple(acts), y5


if __name__ == "__main__":
    key = jax.random.PRNGKey(0)
    k_params, k_x = jax.random.split(key)

    fwd_weights, _fb_weights, _chemicals = init_params(k_params)

    # One-time packing (transpose + pad + bf16 cast) outside the hot path.
    packed = pack_weights(fwd_weights)

    B = 64  # small demo batch; tile picker gives TB=16, grid=(4,)
    x = jax.random.normal(k_x, (B, 1, 784), dtype=jnp.float32)

    fwd = jax.jit(rosenbaum_forward)
    (y0, y1, y2, y3, y4), y5 = fwd(x, packed)
    jax.block_until_ready(y5)

    # Verify against the pure-JAX f32 reference (loose tolerance: bf16 matmuls
    # with f32 accumulation + bf16 activation stores vs f32 reference).
    ref_acts, ref_y5 = reference_forward(x, fwd_weights)
    for got, ref in zip((y0, y1, y2, y3, y4, y5), (*ref_acts, ref_y5)):
        assert got.shape == ref.shape, (got.shape, ref.shape)
        assert jnp.allclose(got.astype(jnp.float32), ref,
                            atol=3e-2, rtol=3e-2), "mismatch vs reference"

    print("KERNEL_OK")
</pallas_src>

<mosaic_0001>
module attributes {stable_mosaic.version = 11 : i64} {
  func.func @_mlp_kernel(%arg0: i32, %arg1: memref<16x784xf32, #tpu.memory_space<vmem>>, %arg2: memref<784x256xbf16, #tpu.memory_space<vmem>>, %arg3: memref<256x256xbf16, #tpu.memory_space<vmem>>, %arg4: memref<256x128xbf16, #tpu.memory_space<vmem>>, %arg5: memref<128x128xbf16, #tpu.memory_space<vmem>>, %arg6: memref<128x128xbf16, #tpu.memory_space<vmem>>, %arg7: memref<16x170xbf16, #tpu.memory_space<vmem>>, %arg8: memref<16x130xbf16, #tpu.memory_space<vmem>>, %arg9: memref<16x100xbf16, #tpu.memory_space<vmem>>, %arg10: memref<16x70xbf16, #tpu.memory_space<vmem>>, %arg11: memref<16x47xf32, #tpu.memory_space<vmem>>) attributes {dimension_semantics = [#tpu.dimension_semantics<parallel>], iteration_bounds = array<i64: 4>, scalar_prefetch = 0 : i64, scratch_operands = 0 : i64, tpu.core_type = #tpu.core_type<tc>, window_params = [{transform_indices = @transform_0, window_bounds = array<i64: 16, 784>}, {pipeline_mode = #tpu.pipeline_mode<synchronous>, transform_indices = @transform_1, window_bounds = array<i64: 784, 256>}, {pipeline_mode = #tpu.pipeline_mode<synchronous>, transform_indices = @transform_2, window_bounds = array<i64: 256, 256>}, {pipeline_mode = #tpu.pipeline_mode<synchronous>, transform_indices = @transform_3, window_bounds = array<i64: 256, 128>}, {pipeline_mode = #tpu.pipeline_mode<synchronous>, transform_indices = @transform_4, window_bounds = array<i64: 128, 128>}, {pipeline_mode = #tpu.pipeline_mode<synchronous>, transform_indices = @transform_5, window_bounds = array<i64: 128, 128>}, {transform_indices = @transform_6, window_bounds = array<i64: 16, 170>}, {transform_indices = @transform_7, window_bounds = array<i64: 16, 130>}, {transform_indices = @transform_8, window_bounds = array<i64: 16, 100>}, {transform_indices = @transform_9, window_bounds = array<i64: 16, 70>}, {transform_indices = @transform_10, window_bounds = array<i64: 16, 47>}]} {
    %c0 = arith.constant 0 : index
    %c0_0 = arith.constant 0 : index
    %0 = vector.load %arg1[%c0, %c0_0] : memref<16x784xf32, #tpu.memory_space<vmem>>, vector<16x784xf32>
    %1 = arith.truncf %0 : vector<16x784xf32> to vector<16x784xbf16>
    %c0_1 = arith.constant 0 : index
    %c0_2 = arith.constant 0 : index
    %2 = vector.load %arg2[%c0_1, %c0_2] : memref<784x256xbf16, #tpu.memory_space<vmem>>, vector<784x256xbf16>
    %cst = arith.constant dense<0.000000e+00> : vector<16x256xf32>
    %3 = tpu.matmul %1, %2, %cst {dimension_numbers = #tpu.dot_dimension_numbers<[1], [0], [0], [1], [0, 0, 1, 1], [], []>} : vector<16x784xbf16>, vector<784x256xbf16>, vector<16x256xf32> -> vector<16x256xf32>
    %cst_3 = arith.constant 1.000000e+01 : f32
    %4 = vector.broadcast %cst_3 : f32 to vector<16x256xf32>
    %5 = arith.mulf %4, %3 : vector<16x256xf32>
    %cst_4 = arith.constant 2.000000e+01 : f32
    %6 = vector.broadcast %cst_4 : f32 to vector<16x256xf32>
    %7 = arith.minimumf %5, %6 : vector<16x256xf32>
    %8 = math.exp %7 : vector<16x256xf32>
    %9 = math.log1p %8 : vector<16x256xf32>
    %cst_5 = arith.constant 1.000000e-01 : f32
    %10 = vector.broadcast %cst_5 : f32 to vector<16x256xf32>
    %11 = arith.mulf %9, %10 : vector<16x256xf32>
    %cst_6 = arith.constant 2.000000e+01 : f32
    %12 = vector.broadcast %cst_6 : f32 to vector<16x256xf32>
    %13 = arith.cmpf ogt, %5, %12 : vector<16x256xf32>
    %14 = arith.select %13, %3, %11 : vector<16x256xi1>, vector<16x256xf32>
    %15 = arith.truncf %14 : vector<16x256xf32> to vector<16x256xbf16>
    %16 = vector.extract_strided_slice %15 {offsets = [0, 0], sizes = [16, 170], strides = [1, 1]} : vector<16x256xbf16> to vector<16x170xbf16>
    %c0_7 = arith.constant 0 : index
    %c0_8 = arith.constant 0 : index
    %17 = vector.load %arg7[%c0_7, %c0_8] : memref<16x170xbf16, #tpu.memory_space<vmem>>, vector<16x170xbf16>
    tpu.vector_store %arg7[%c0_7, %c0_8], %16 {strides = array<i32>} : memref<16x170xbf16, #tpu.memory_space<vmem>>, vector<16x170xbf16>,
    %c0_9 = arith.constant 0 : index
    %c0_10 = arith.constant 0 : index
    %18 = vector.load %arg3[%c0_9, %c0_10] : memref<256x256xbf16, #tpu.memory_space<vmem>>, vector<256x256xbf16>
    %cst_11 = arith.constant dense<0.000000e+00> : vector<16x256xf32>
    %19 = tpu.matmul %15, %18, %cst_11 {dimension_numbers = #tpu.dot_dimension_numbers<[1], [0], [0], [1], [0, 0, 1, 1], [], []>} : vector<16x256xbf16>, vector<256x256xbf16>, vector<16x256xf32> -> vector<16x256xf32>
    %cst_12 = arith.constant 1.000000e+01 : f32
    %20 = vector.broadcast %cst_12 : f32 to vector<16x256xf32>
    %21 = arith.mulf %20, %19 : vector<16x256xf32>
    %cst_13 = arith.constant 2.000000e+01 : f32
    %22 = vector.broadcast %cst_13 : f32 to vector<16x256xf32>
    %23 = arith.minimumf %21, %22 : vector<16x256xf32>
    %24 = math.exp %23 : vector<16x256xf32>
    %25 = math.log1p %24 : vector<16x256xf32>
    %cst_14 = arith.constant 1.000000e-01 : f32
    %26 = vector.broadcast %cst_14 : f32 to vector<16x256xf32>
    %27 = arith.mulf %25, %26 : vector<16x256xf32>
    %cst_15 = arith.constant 2.000000e+01 : f32
    %28 = vector.broadcast %cst_15 : f32 to vector<16x256xf32>
    %29 = arith.cmpf ogt, %21, %28 : vector<16x256xf32>
    %30 = arith.select %29, %19, %27 : vector<16x256xi1>, vector<16x256xf32>
    %31 = arith.truncf %30 : vector<16x256xf32> to vector<16x256xbf16>
    %32 = vector.extract_strided_slice %31 {offsets = [0, 0], sizes = [16, 130], strides = [1, 1]} : vector<16x256xbf16> to vector<16x130xbf16>
    %c0_16 = arith.constant 0 : index
    %c0_17 = arith.constant 0 : index
    %33 = vector.load %arg8[%c0_16, %c0_17] : memref<16x130xbf16, #tpu.memory_space<vmem>>, vector<16x130xbf16>
    tpu.vector_store %arg8[%c0_16, %c0_17], %32 {strides = array<i32>} : memref<16x130xbf16, #tpu.memory_space<vmem>>, vector<16x130xbf16>,
    %c0_18 = arith.constant 0 : index
    %c0_19 = arith.constant 0 : index
    %34 = vector.load %arg4[%c0_18, %c0_19] : memref<256x128xbf16, #tpu.memory_space<vmem>>, vector<256x128xbf16>
    %cst_20 = arith.constant dense<0.000000e+00> : vector<16x128xf32>
    %35 = tpu.matmul %31, %34, %cst_20 {dimension_numbers = #tpu.dot_dimension_numbers<[1], [0], [0], [1], [0, 0, 1, 1], [], []>} : vector<16x256xbf16>, vector<256x128xbf16>, vector<16x128xf32> -> vector<16x128xf32>
    %cst_21 = arith.constant 1.000000e+01 : f32
    %36 = vector.broadcast %cst_21 : f32 to vector<16x128xf32>
    %37 = arith.mulf %36, %35 : vector<16x128xf32>
    %cst_22 = arith.constant 2.000000e+01 : f32
    %38 = vector.broadcast %cst_22 : f32 to vector<16x128xf32>
    %39 = arith.minimumf %37, %38 : vector<16x128xf32>
    %40 = math.exp %39 : vector<16x128xf32>
    %41 = math.log1p %40 : vector<16x128xf32>
    %cst_23 = arith.constant 1.000000e-01 : f32
    %42 = vector.broadcast %cst_23 : f32 to vector<16x128xf32>
    %43 = arith.mulf %41, %42 : vector<16x128xf32>
    %cst_24 = arith.constant 2.000000e+01 : f32
    %44 = vector.broadcast %cst_24 : f32 to vector<16x128xf32>
    %45 = arith.cmpf ogt, %37, %44 : vector<16x128xf32>
    %46 = arith.select %45, %35, %43 : vector<16x128xi1>, vector<16x128xf32>
    %47 = arith.truncf %46 : vector<16x128xf32> to vector<16x128xbf16>
    %48 = vector.extract_strided_slice %47 {offsets = [0, 0], sizes = [16, 100], strides = [1, 1]} : vector<16x128xbf16> to vector<16x100xbf16>
    %c0_25 = arith.constant 0 : index
    %c0_26 = arith.constant 0 : index
    %49 = vector.load %arg9[%c0_25, %c0_26] : memref<16x100xbf16, #tpu.memory_space<vmem>>, vector<16x100xbf16>
    tpu.vector_store %arg9[%c0_25, %c0_26], %48 {strides = array<i32>} : memref<16x100xbf16, #tpu.memory_space<vmem>>, vector<16x100xbf16>,
    %c0_27 = arith.constant 0 : index
    %c0_28 = arith.constant 0 : index
    %50 = vector.load %arg5[%c0_27, %c0_28] : memref<128x128xbf16, #tpu.memory_space<vmem>>, vector<128x128xbf16>
    %cst_29 = arith.constant dense<0.000000e+00> : vector<16x128xf32>
    %51 = tpu.matmul %47, %50, %cst_29 {dimension_numbers = #tpu.dot_dimension_numbers<[1], [0], [0], [1], [0, 0, 1, 1], [], []>} : vector<16x128xbf16>, vector<128x128xbf16>, vector<16x128xf32> -> vector<16x128xf32>
    %cst_30 = arith.constant 1.000000e+01 : f32
    %52 = vector.broadcast %cst_30 : f32 to vector<16x128xf32>
    %53 = arith.mulf %52, %51 : vector<16x128xf32>
    %cst_31 = arith.constant 2.000000e+01 : f32
    %54 = vector.broadcast %cst_31 : f32 to vector<16x128xf32>
    %55 = arith.minimumf %53, %54 : vector<16x128xf32>
    %56 = math.exp %55 : vector<16x128xf32>
    %57 = math.log1p %56 : vector<16x128xf32>
    %cst_32 = arith.constant 1.000000e-01 : f32
    %58 = vector.broadcast %cst_32 : f32 to vector<16x128xf32>
    %59 = arith.mulf %57, %58 : vector<16x128xf32>
    %cst_33 = arith.constant 2.000000e+01 : f32
    %60 = vector.broadcast %cst_33 : f32 to vector<16x128xf32>
    %61 = arith.cmpf ogt, %53, %60 : vector<16x128xf32>
    %62 = arith.select %61, %51, %59 : vector<16x128xi1>, vector<16x128xf32>
    %63 = arith.truncf %62 : vector<16x128xf32> to vector<16x128xbf16>
    %64 = vector.extract_strided_slice %63 {offsets = [0, 0], sizes = [16, 70], strides = [1, 1]} : vector<16x128xbf16> to vector<16x70xbf16>
    %c0_34 = arith.constant 0 : index
    %c0_35 = arith.constant 0 : index
    %65 = vector.load %arg10[%c0_34, %c0_35] : memref<16x70xbf16, #tpu.memory_space<vmem>>, vector<16x70xbf16>
    tpu.vector_store %arg10[%c0_34, %c0_35], %64 {strides = array<i32>} : memref<16x70xbf16, #tpu.memory_space<vmem>>, vector<16x70xbf16>,
    %c0_36 = arith.constant 0 : index
    %c0_37 = arith.constant 0 : index
    %66 = vector.load %arg6[%c0_36, %c0_37] : memref<128x128xbf16, #tpu.memory_space<vmem>>, vector<128x128xbf16>
    %cst_38 = arith.constant dense<0.000000e+00> : vector<16x128xf32>
    %67 = tpu.matmul %63, %66, %cst_38 {dimension_numbers = #tpu.dot_dimension_numbers<[1], [0], [0], [1], [0, 0, 1, 1], [], []>} : vector<16x128xbf16>, vector<128x128xbf16>, vector<16x128xf32> -> vector<16x128xf32>
    %68 = vector.extract_strided_slice %67 {offsets = [0, 0], sizes = [16, 47], strides = [1, 1]} : vector<16x128xf32> to vector<16x47xf32>
    %c0_39 = arith.constant 0 : index
    %c0_40 = arith.constant 0 : index
    %69 = vector.load %arg11[%c0_39, %c0_40] : memref<16x47xf32, #tpu.memory_space<vmem>>, vector<16x47xf32>
    tpu.vector_store %arg11[%c0_39, %c0_40], %68 {strides = array<i32>} : memref<16x47xf32, #tpu.memory_space<vmem>>, vector<16x47xf32>,
    return
  }
  func.func @transform_0(%arg0: i32) -> (i32, i32) {
    %c0_i32 = arith.constant 0 : i32
    %c0_i32_0 = arith.constant 0 : i32
    return %arg0, %c0_i32 : i32, i32
  }
  func.func @transform_1(%arg0: i32) -> (i32, i32) {
    %c0_i32 = arith.constant 0 : i32
    %c0_i32_0 = arith.constant 0 : i32
    %c0_i32_1 = arith.constant 0 : i32
    return %c0_i32, %c0_i32_0 : i32, i32
  }
  func.func @transform_2(%arg0: i32) -> (i32, i32) {
    %c0_i32 = arith.constant 0 : i32
    %c0_i32_0 = arith.constant 0 : i32
    %c0_i32_1 = arith.constant 0 : i32
    return %c0_i32, %c0_i32_0 : i32, i32
  }
  func.func @transform_3(%arg0: i32) -> (i32, i32) {
    %c0_i32 = arith.constant 0 : i32
    %c0_i32_0 = arith.constant 0 : i32
    %c0_i32_1 = arith.constant 0 : i32
    return %c0_i32, %c0_i32_0 : i32, i32
  }
  func.func @transform_4(%arg0: i32) -> (i32, i32) {
    %c0_i32 = arith.constant 0 : i32
    %c0_i32_0 = arith.constant 0 : i32
    %c0_i32_1 = arith.constant 0 : i32
    return %c0_i32, %c0_i32_0 : i32, i32
  }
  func.func @transform_5(%arg0: i32) -> (i32, i32) {
    %c0_i32 = arith.constant 0 : i32
    %c0_i32_0 = arith.constant 0 : i32
    %c0_i32_1 = arith.constant 0 : i32
    return %c0_i32, %c0_i32_0 : i32, i32
  }
  func.func @transform_6(%arg0: i32) -> (i32, i32) {
    %c0_i32 = arith.constant 0 : i32
    %c0_i32_0 = arith.constant 0 : i32
    return %arg0, %c0_i32 : i32, i32
  }
  func.func @transform_7(%arg0: i32) -> (i32, i32) {
    %c0_i32 = arith.constant 0 : i32
    %c0_i32_0 = arith.constant 0 : i32
    return %arg0, %c0_i32 : i32, i32
  }
  func.func @transform_8(%arg0: i32) -> (i32, i32) {
    %c0_i32 = arith.constant 0 : i32
    %c0_i32_0 = arith.constant 0 : i32
    return %arg0, %c0_i32 : i32, i32
  }
  func.func @transform_9(%arg0: i32) -> (i32, i32) {
    %c0_i32 = arith.constant 0 : i32
    %c0_i32_0 = arith.constant 0 : i32
    return %arg0, %c0_i32 : i32, i32
  }
  func.func @transform_10(%arg0: i32) -> (i32, i32) {
    %c0_i32 = arith.constant 0 : i32
    %c0_i32_0 = arith.constant 0 : i32
    return %arg0, %c0_i32 : i32, i32
  }
}

</mosaic_0001>

<bundles_post_ra>
// kernel: rosenbaum_forward.1
= control target key start
LH: loop header
LB: loop body
LE: loop exit
PB: predicated region body
PF: predicated region fallthrough
CT: control target
= control target key end

     0   :  { %s4107_s0 = inlined_call_operand.vmem [shape: f32[64,784], index: 0, kind: input, shape index: {}]   ;;  %s4108_s1 = inlined_call_operand.vmem [shape: bf16[784,256], index: 1, kind: input, shape index: {}]   ;;  %s4109_s2 = inlined_call_operand.hbm [shape: bf16[256,256], index: 2, kind: input, shape index: {}]   ;;  %s4110_s3 = inlined_call_operand.hbm [shape: bf16[256,128], index: 3, kind: input, shape index: {}]   ;;  %s4111_s4 = inlined_call_operand.vmem [shape: bf16[128,128], index: 4, kind: input, shape index: {}]   ;;  %s4112_s5 = inlined_call_operand.hbm [shape: bf16[128,128], index: 5, kind: input, shape index: {}]   ;;  %s4113_s6 = inlined_call_operand.hbm [shape: bf16[64,170], index: 6, kind: output, shape index: {0}]   ;;  %s4114_s7 = inlined_call_operand.hbm [shape: bf16[64,130], index: 7, kind: output, shape index: {1}]   ;;  %s4115_s8 = inlined_call_operand.hbm [shape: bf16[64,100], index: 8, kind: output, shape index: {2}]   ;;  %s4116_s9 = inlined_call_operand.hbm [shape: bf16[64,70], index: 9, kind: output, shape index: {3}]   ;;  %s4117_s10 = inlined_call_operand.vmem [shape: f32[64,47], index: 10, kind: output, shape index: {4}]  }
   0x1   :  { %4123 = sst [smem:[#allocation21_spill]] %s4107_s0 }
   0x2   :  { %4124 = sst [smem:[#allocation22_spill]] %s4108_s1 }
   0x3   :  { %4125 = sst [smem:[#allocation23_spill]] %s4109_s2 }
   0x4   :  { %4126 = sst [smem:[#allocation24_spill]] %s4110_s3 }
   0x5   :  { %4127 = sst [smem:[#allocation25_spill]] %s4111_s4 }
   0x6   :  { %16 = vsyncpa [#allocation3], 0 }
   0x7   :  { %17 = vsyncpa [#allocation6], 0 }
   0x8   :  { %18 = vsyncpa [#allocation4], 0 }
   0x9   :  { %20 = vsyncpa [#allocation4 + $0x1], 0 }
   0xa   :  { %21 = vsyncpa [#allocation10], 0 }
   0xb   :  { %23 = vsyncpa [#allocation10 + $0x1], 0 }
   0xc   :  { %24 = vsyncpa [#allocation13], 0 }
   0xd   :  { %26 = vsyncpa [#allocation13 + $0x1], 0  ;;  %s3379_s13 = smov 0   ;;  %s3381_s14 = smov 0  }
   0xe   :  { %s3383_s15 = smov 0   ;;  %s3385_s16 = smov 0  }
   0xf LB: > { %4128 = sst [smem:[#allocation19_spill]] %s3300_s15  ;;  %s3400_s17 = sadd.s32 4294967295, %s3304_s16   ;;  %s3304_s16 = sphi %s3385_s16, %s4149_s16   ;;  %s3300_s15 = sphi %s3383_s15, %s4146_s15   ;;  %s3296_s14 = sphi %s3381_s14, %s4148_s14   ;;  %s3292_s13 = sphi %s3379_s13, %s4147_s13  }
  0x10   : > { %s4118_s18 = sadd.s32 4294967294, %s3304_s16   ;;  %s3404_s19 = sadd.s32 1, %s3304_s16  }
  0x11   : > { %s170_s20 = sadd.s32 1, %s3300_s15  ;;  %s167_s21 = ssub.s32 %s3304_s16, %s3404_s19 }
  0x12   : > { %p180_p0 = scmp.ne.s32.totalorder %s3300_s15, %s3296_s14  ;;  %p168_p1 = scmp.eq.s32.totalorder %s167_s21, 0 }
  0x13   : > { %p181_p2 = scmp.eq.s32.totalorder %s3400_s17, 3  ;;  %p186_p3 = scmp.ne.s32.totalorder %s3296_s14, %s3292_s13 }
  0x14   : > { %p187_p4 = scmp.eq.s32.totalorder %s4118_s18, 3  ;;  %p2402_p7 = scmp.ge.s32.totalorder %s3304_s16, 1 }
  0x15   : > { %s3417_s22 = scalar_select %p168_p1, %s3300_s15, %s170_s20  }
  0x16   : > { %p3419_p5 = por %p181_p2, %p180_p0  ;;  %p3423_p6 = por %p187_p4, %p186_p3 }
  0x17   : > { %4129 = sst [smem:[#allocation20_spill]] %s3417_s22  ;;  %p298_p8 = scmp.lt.s32.totalorder %s3304_s16, 5 }
  0x18   : > { %p2744_p9 = scmp.eq.s32.totalorder %s3400_s17, 0  ;;  %s3306_s26 = smov [#allocation5]  }
  0x19   : > { %p3430_p10 = pnand %p2402_p7, %p298_p8  ;;  %s326_s27 = sshll.u32 %s3306_s26, 4  ;;  %s327_s27 = int_to_ptr.vmem [resolvable:$true] %s326_s27 }
  0x1a   : > { %s3307_s29 = smov [#allocation2]   ;;  %s3083_s11 = scalar_lea.vmem %s327_s27, 2048 }
  0x1b   : > { %p2721_p11 = pneg %p3430_p10  ;;  %s313_s30 = sshll.u32 %s3307_s29, 4  ;;  %s314_s30 = int_to_ptr.vmem [resolvable:$true] %s313_s30 }
  0x1c   : > { %p3084_p0 = scmp.ne.s32.totalorder %s327_s27, %s3083_s11  ;;  %p3091_p3 = scmp.lt.s32.totalorder %s327_s27, %s327_s27 }
  0x1d   : > { %p3438_p12 = pnand %p2744_p9, %p2721_p11  ;;  %p3092_p4 = scmp.lt.s32.totalorder %s3083_s11, %s3083_s11 }
  0x1f   : > { %p3074_p13 = pneg %p3438_p12  ;;  %p3093_p7 = por %p3092_p4, %p3091_p3 }
  0x21   : > { %p3086_p1 = pnand %p3084_p0, %p3074_p13 }
  0x23   : > { %p3087_p2 = pneg %p3086_p1 }
  0x25   : > { %p3094_p8 = pnand %p3093_p7, %p3087_p2 }
  0x27   : > { %3097 = shalt.err (!%p3094_p8)
}
  0x28   : > { %s3308_s12 = smov 64   ;;  %s3309_s20 = smov 4  }
  0x29   : > { %s4134_s3 = sld [smem:[#allocation24_spill]]  ;;  %s3109_s29 = scalar_lea.vmem %s314_s30, 4096 }
  0x2a   : > { %p3110_p11 = scmp.ne.s32.totalorder %s314_s30, %s3109_s29  ;;  %p3117_p2 = scmp.lt.s32.totalorder %s314_s30, %s314_s30 }
  0x2b   : > { %p3118_p3 = scmp.lt.s32.totalorder %s3109_s29, %s3109_s29 }
  0x2c   : > { %p3112_p0 = pnand %p3110_p11, %p3074_p13 }
  0x2d   : > { %p3119_p4 = por %p3118_p3, %p3117_p2 }
  0x2e   : > { %p3113_p1 = pneg %p3112_p0 }
  0x2f   : > { %2727 = dma.hbm_to_vmem [thread:$0]  (!%p3438_p12), %s4134_s3, 2048, %s327_s27, [#allocation6], %s3308_s12, %s3308_s12, %s3309_s20  }
  0x30   : > { %p3120_p7 = pnand %p3119_p4, %p3113_p1 }
  0x32   : > { %3123 = shalt.err (!%p3120_p7)
}
  0x33   : > { %s3310_s11 = smov 128   ;;  %s3311_s18 = smov 8  }
  0x34   : > { %s4135_s2 = sld [smem:[#allocation23_spill]]  ;;  %s3312_s27 = smov [#allocation7]  }
  0x35   : > { %s342_s21 = sshll.u32 %s3312_s27, 4  ;;  %s343_s21 = int_to_ptr.vmem [resolvable:$true] %s342_s21 }
  0x36   : > { %s3135_s26 = scalar_lea.vmem %s343_s21, 1024  ;;  %p3143_p1 = scmp.lt.s32.totalorder %s343_s21, %s343_s21 }
  0x37   : > { %p3136_p8 = scmp.ne.s32.totalorder %s343_s21, %s3135_s26  ;;  %p3144_p2 = scmp.lt.s32.totalorder %s3135_s26, %s3135_s26 }
  0x39   : > { %p3138_p11 = pnand %p3136_p8, %p3074_p13  ;;  %p3145_p3 = por %p3144_p2, %p3143_p1 }
  0x3a   : > { %2724 = dma.hbm_to_vmem [thread:$0]  (!%p3438_p12), %s4135_s2, 4096, %s314_s30, [#allocation3], %s3310_s11, %s3310_s11, %s3311_s18  }
  0x3b   : > { %p3139_p0 = pneg %p3138_p11 }
  0x3d   : > { %p3146_p4 = pnand %p3145_p3, %p3139_p0 }
  0x3f   : > { %3149 = shalt.err (!%p3146_p4)
}
  0x40   : > { %2730 = dma.hbm_to_vmem [thread:$0]  (!%p3438_p12), %s4112_s5, 1024, %s343_s21, [#allocation6], %s3308_s12, %s3308_s12, %s3309_s20  }
  0x41   : > { %368 = sbr.rel (%p3430_p10) target bundleno = 1385 (0x569), region = 44 }
  0x46   : > { %3271 = dma.done.wait (%p2744_p9), [#allocation3], 4096  }
  0x47   : > { %3273 = vsyncadd (%p2744_p9), [#allocation3], 4294963200 }
  0x48   : > { %3275 = dma.done.wait (%p2744_p9), [#allocation6], 3072  }
  0x49   : > { %3277 = vsyncadd (%p2744_p9), [#allocation6], 4294964224  ;;  %s4136_s1 = sld [smem:[#allocation22_spill]]  ;;  %s2415_s29 = sshll.u32 %s3400_s17, 1  ;;  %vm1062_vm0 = vcmask 130048   ;;  %vm1314_vm3 = vcmask 1043456  }
  0x4a   : > { %p436_p9 = scmp.lt.s32.totalorder %s2415_s29, 7  ;;  %s4137_s0 = sld [smem:[#allocation21_spill]]  ;;  %vm1315_vm4 = vcmask 343044   ;;  %vm1630_vm14 = vcmask 15364  }
  0x4b   : > { %vm1316_vm8 = vmor %vm1315_vm4, %vm1314_vm3  ;;  %s4140_s4 = sld [smem:[#allocation25_spill]]  ;;  %s2107_s27 = sand.u32 1, %s3400_s17  }
  0x4c   : > { %s4151_s29 = smov (!%p436_p9, %s2415_s29), 7  ;;  %s2615_s21 = sshll.u32 %s3400_s17, 8 }
  0x4d   : > { %s2700_s30 = smul.u32 56, %s4151_s29  ;;  %s3952_s15 = scalar_lea.hbm %s4114_s7, %s2615_s21 }
  0x4e   : > { %s3962_s2 = scalar_lea.sflag [#allocation10], %s2107_s27 }
  0x4f   : > { %v2797_v0 = vld [vmem:[%s4136_s1 + $0x74] ss:$8 sps:$4 sm:$0xff]   ;;  %v2801_v2 = vld [vmem:[%s4136_s1 + $0x70] ss:$8 sps:$4 sm:$0xff]   ;;  %v2803_v4 = vld [vmem:[%s4136_s1 + $0x64] ss:$8 sps:$4 sm:$0xff]  }
  0x50   : > { %v2799_v1 = vld [vmem:[%s4136_s1 + $0x174] ss:$8 sps:$4 sm:$0xff]   ;;  %1066 = vmatprep.subr.bf16.mxu0 %v2797_v0  ;;  %v2802_v3 = vld [vmem:[%s4136_s1 + $0x170] ss:$8 sps:$4 sm:$0xff]   ;;  %v2805_v5 = vld [vmem:[%s4136_s1 + $0x164] ss:$8 sps:$4 sm:$0xff]   ;;  %s3623_s25 = scalar_lea.vmem %s4137_s0, %s2700_s30 }
  0x51   : > { %1109 = vmatprep.subr.bf16.mxu1 %v2799_v1  ;;  %1067 = vmatpush1.bf16.msra.mxu0 %v2801_v2  ;;  %v2807_v6 = vld [vmem:[%s4136_s1 + $0x60] ss:$8 sps:$4 sm:$0xff]   ;;  %v2809_v8 = vld [vmem:[%s4136_s1 + $0x54] ss:$8 sps:$4 sm:$0xff]   ;;  %v2813_v10 = vld [vmem:[%s4136_s1 + $0x50] ss:$8 sps:$4 sm:$0xff]  }
  0x52   : > { %1110 = vmatpush1.bf16.msra.mxu1 %v2802_v3  ;;  %1068 = vmatprep.subr.bf16.mxu0 %v2803_v4  ;;  %v2808_v7 = vld [vmem:[%s4136_s1 + $0x160] ss:$8 sps:$4 sm:$0xff]   ;;  %v2811_v9 = vld [vmem:[%s4136_s1 + $0x154] ss:$8 sps:$4 sm:$0xff]   ;;  %v2814_v11 = vld [vmem:[%s4136_s1 + $0x150] ss:$8 sps:$4 sm:$0xff]  }
  0x53   : > { %1111 = vmatprep.subr.bf16.mxu1 %v2805_v5  ;;  %v2815_v12 = vld [vmem:[%s4136_s1 + $0x44] ss:$8 sps:$4 sm:$0xff]   ;;  %v2819_v14 = vld [vmem:[%s4136_s1 + $0x40] ss:$8 sps:$4 sm:$0xff]   ;;  %v2821_v16 = vld [vmem:[%s4136_s1 + $0x34] ss:$8 sps:$4 sm:$0xff]  }
  0x54   : > { %v2817_v13 = vld [vmem:[%s4136_s1 + $0x144] ss:$8 sps:$4 sm:$0xff]   ;;  %v2820_v15 = vld [vmem:[%s4136_s1 + $0x140] ss:$8 sps:$4 sm:$0xff]   ;;  %v2823_v17 = vld [vmem:[%s4136_s1 + $0x134] ss:$8 sps:$4 sm:$0xff]  }
  0x55   : > { %1069 = vmatpush1.bf16.msra.mxu0 %v2807_v6  ;;  %v2825_v18 = vld [vmem:[%s4136_s1 + $0x30] ss:$8 sps:$4 sm:$0xff]   ;;  %v2827_v20 = vld [vmem:[%s4136_s1 + $0x24] ss:$8 sps:$4 sm:$0xff]   ;;  %v2831_v22 = vld [vmem:[%s4136_s1 + $0x20] ss:$8 sps:$4 sm:$0xff]  }
  0x56   : > { %1112 = vmatpush1.bf16.msra.mxu1 %v2808_v7  ;;  %1070 = vmatprep.subr.bf16.mxu0 %v2809_v8  ;;  %v2826_v19 = vld [vmem:[%s4136_s1 + $0x130] ss:$8 sps:$4 sm:$0xff]   ;;  %v2829_v21 = vld [vmem:[%s4136_s1 + $0x124] ss:$8 sps:$4 sm:$0xff]   ;;  %v2832_v23 = vld [vmem:[%s4136_s1 + $0x120] ss:$8 sps:$4 sm:$0xff]  }
  0x57   : > { %1113 = vmatprep.subr.bf16.mxu1 %v2811_v9  ;;  %v2833_v24 = vld [vmem:[%s4136_s1 + $0x14] ss:$8 sps:$4 sm:$0xff]   ;;  %v2837_v26 = vld [vmem:[%s4136_s1 + $0x10] ss:$8 sps:$4 sm:$0xff]   ;;  %v2839_v28 = vld [vmem:[%s4136_s1 + $0x4] ss:$8 sps:$4 sm:$0xff]  }
  0x58   : > { %v2835_v25 = vld [vmem:[%s4136_s1 + $0x114] ss:$8 sps:$4 sm:$0xff]   ;;  %v2838_v27 = vld [vmem:[%s4136_s1 + $0x110] ss:$8 sps:$4 sm:$0xff]   ;;  %v2841_v29 = vld [vmem:[%s4136_s1 + $0x104] ss:$8 sps:$4 sm:$0xff]  }
  0x59   : > { %1071 = vmatpush1.bf16.msra.mxu0 %v2813_v10  ;;  %v2843_v30 = vld [vmem:[%s4136_s1] ss:$8 sps:$4 sm:$0xff]   ;;  %v2845_v32 = vld [vmem:[%s4136_s1 + $0xf4] ss:$8 sps:$4 sm:$0xff]   ;;  %v2849_v34 = vld [vmem:[%s4136_s1 + $0xf0] ss:$8 sps:$4 sm:$0xff]  }
  0x5a   : > { %1114 = vmatpush1.bf16.msra.mxu1 %v2814_v11  ;;  %1072 = vmatprep.subr.bf16.mxu0 %v2815_v12  ;;  %v2844_v31 = vld [vmem:[%s4136_s1 + $0x100] ss:$8 sps:$4 sm:$0xff]   ;;  %v2847_v33 = vld [vmem:[%s4136_s1 + $0x1f4] ss:$8 sps:$4 sm:$0xff]   ;;  %v2850_v35 = vld [vmem:[%s4136_s1 + $0x1f0] ss:$8 sps:$4 sm:$0xff]  }
  0x5b   : > { %1115 = vmatprep.subr.bf16.mxu1 %v2817_v13  ;;  %v2851_v36 = vld [vmem:[%s4136_s1 + $0xe4] ss:$8 sps:$4 sm:$0xff]   ;;  %v2855_v38 = vld [vmem:[%s4136_s1 + $0xe0] ss:$8 sps:$4 sm:$0xff]   ;;  %v2857_v40 = vld [vmem:[%s4136_s1 + $0xd4] ss:$8 sps:$4 sm:$0xff]  }
  0x5c   : > { %v2853_v37 = vld [vmem:[%s4136_s1 + $0x1e4] ss:$8 sps:$4 sm:$0xff]   ;;  %v2856_v39 = vld [vmem:[%s4136_s1 + $0x1e0] ss:$8 sps:$4 sm:$0xff]   ;;  %v2859_v41 = vld [vmem:[%s4136_s1 + $0x1d4] ss:$8 sps:$4 sm:$0xff]  }
  0x5d   : > { %1073 = vmatpush1.bf16.msra.mxu0 %v2819_v14  ;;  %v2861_v42 = vld [vmem:[%s4136_s1 + $0xd0] ss:$8 sps:$4 sm:$0xff]   ;;  %v2863_v44 = vld [vmem:[%s4136_s1 + $0xc4] ss:$8 sps:$4 sm:$0xff]   ;;  %v2867_v50 = vld [vmem:[%s4136_s1 + $0xc0] ss:$8 sps:$4 sm:$0xff]  }
  0x5e   : > { %1116 = vmatpush1.bf16.msra.mxu1 %v2820_v15  ;;  %1074 = vmatprep.subr.bf16.mxu0 %v2821_v16  ;;  %v2862_v43 = vld [vmem:[%s4136_s1 + $0x1d0] ss:$8 sps:$4 sm:$0xff]   ;;  %v2865_v45 = vld [vmem:[%s4136_s1 + $0x1c4] ss:$8 sps:$4 sm:$0xff]   ;;  %v2868_v51 = vld [vmem:[%s4136_s1 + $0x1c0] ss:$8 sps:$4 sm:$0xff]  }
  0x5f   : > { %1117 = vmatprep.subr.bf16.mxu1 %v2823_v17  ;;  %v454_v46 = vld [vmem:[%s3623_s25 + $0x8] sm:$0xff]  ;;  %v461_v47 = vld [vmem:[%s3623_s25 + $0x40] sm:$0xff]  ;;  %v456_v48 = vld [vmem:[%s3623_s25 + $0x18] sm:$0xff]  ;;  %s3316_s30 = smov [#allocation9]  }
  0x60   : > { %v463_v49 = vld [vmem:[%s3623_s25 + $0x50] sm:$0xff]  ;;  %v468_v53 = vpack.c.bf16 %v461_v47, %v454_v46  ;;  %v2875_v58 = vld [vmem:[%s4136_s1 + $0xa4] ss:$8 sps:$4 sm:$0xff]   ;;  %v2879_v60 = vld [vmem:[%s4136_s1 + $0xa0] ss:$8 sps:$4 sm:$0xff]   ;;  %s3154_s26 = sshll.u32 %s3316_s30, 4  ;;  %s3155_s26 = int_to_ptr.vmem [resolvable:$false] %s3154_s26 }
  0x61   : > { %1075 = vmatpush1.bf16.msra.mxu0 %v2825_v18  ;;  %v2869_v52 = vld [vmem:[%s4136_s1 + $0xb4] ss:$8 sps:$4 sm:$0xff]   ;;  %v470_v54 = vpack.c.bf16 %v463_v49, %v456_v48  ;;  %v2873_v56 = vld [vmem:[%s4136_s1 + $0xb0] ss:$8 sps:$4 sm:$0xff]   ;;  %v2877_v59 = vld [vmem:[%s4136_s1 + $0x1a4] ss:$8 sps:$4 sm:$0xff]  }
  0x62   : > { %1118 = vmatpush1.bf16.msra.mxu1 %v2826_v19  ;;  %1076 = vmatprep.subr.bf16.mxu0 %v2827_v20  ;;  %v2871_v55 = vld [vmem:[%s4136_s1 + $0x1b4] ss:$8 sps:$4 sm:$0xff]   ;;  %v2874_v57 = vld [vmem:[%s4136_s1 + $0x1b0] ss:$8 sps:$4 sm:$0xff]   ;;  %v2880_v61 = vld [vmem:[%s4136_s1 + $0x1a0] ss:$8 sps:$4 sm:$0xff]  }
  0x63   : > { %1119 = vmatprep.subr.bf16.mxu1 %v2829_v21  ;;  %1098 = vmatprep.mubr.bf16.mxu0 %v468_v53  ;;  %v2881_v62 = vld [vmem:[%s4136_s1 + $0x94] ss:$8 sps:$4 sm:$0xff]   ;;  %v2885_v0 = vld [vmem:[%s4136_s1 + $0x90] ss:$8 sps:$4 sm:$0xff]   ;;  %v2887_v2 = vld [vmem:[%s4136_s1 + $0x84] ss:$8 sps:$4 sm:$0xff]  }
  0x64   : > { %1141 = vmatprep.mubr.bf16.mxu1 %v470_v54  ;;  %v2883_v63 = vld [vmem:[%s4136_s1 + $0x194] ss:$8 sps:$4 sm:$0xff]   ;;  %v2886_v1 = vld [vmem:[%s4136_s1 + $0x190] ss:$8 sps:$4 sm:$0xff]   ;;  %v2889_v3 = vld [vmem:[%s4136_s1 + $0x184] ss:$8 sps:$4 sm:$0xff]  }
  0x65   : > { %1077 = vmatpush1.bf16.msra.mxu0 %v2831_v22  ;;  %v2891_v4 = vld [vmem:[%s4136_s1 + $0x80] ss:$8 sps:$4 sm:$0xff]   ;;  %v460_v7 = vld [vmem:[%s3623_s25 + $0x38] sm:$0xff]  ;;  %v455_v8 = vld [vmem:[%s3623_s25 + $0x10] sm:$0xff] }
  0x66   : > { %1120 = vmatpush1.bf16.msra.mxu1 %v2832_v23  ;;  %1078 = vmatprep.subr.bf16.mxu0 %v2833_v24  ;;  %v2892_v5 = vld [vmem:[%s4136_s1 + $0x180] ss:$8 sps:$4 sm:$0xff]   ;;  %v2895_v10 = vld [vmem:[%s4136_s1 + $0x274] ss:$8 sps:$4 sm:$0xff]   ;;  %v2893_v13 = vld [vmem:[%s4136_s1 + $0x270] ss:$8 sps:$4 sm:$0xff]  }
  0x67   : > { %1121 = vmatprep.subr.bf16.mxu1 %v2835_v25  ;;  %v453_v6 = vld [vmem:[%s3623_s25] sm:$0xff]  ;;  %v462_v9 = vld [vmem:[%s3623_s25 + $0x48] sm:$0xff]  ;;  %v459_v18 = vld [vmem:[%s3623_s25 + $0x30] sm:$0xff]  ;;  %v3313_v24 = vmov 0  }
  0x68   : > { %v467_v11 = vpack.c.bf16 %v460_v7, %v453_v6  ;;  %v469_v12 = vpack.c.bf16 %v462_v9, %v455_v8  ;;  %v2898_v14 = vld [vmem:[%s4136_s1 + $0x264] ss:$8 sps:$4 sm:$0xff]   ;;  %v2938_v15 = vld [vmem:[%s4136_s1 + $0x300] ss:$8 sps:$4 sm:$0xff]   ;;  %v2901_v21 = vld [vmem:[%s4136_s1 + $0x254] ss:$8 sps:$4 sm:$0xff]  }
  0x69   : > { %1079 = vmatpush1.bf16.msra.mxu0 %v2837_v26  ;;  %v2940_v16 = vld [vmem:[%s4136_s1 + $0x304] ss:$8 sps:$4 sm:$0xff]   ;;  %v2896_v17 = vld [vmem:[%s4136_s1 + $0x260] ss:$8 sps:$4 sm:$0xff]   ;;  %v2899_v23 = vld [vmem:[%s4136_s1 + $0x250] ss:$8 sps:$4 sm:$0xff]  }
  0x6a   : > { %1122 = vmatpush1.bf16.msra.mxu1 %v2838_v27  ;;  %1080 = vmatprep.subr.bf16.mxu0 %v2839_v28  ;;  %v466_v19 = vld [vmem:[%s3623_s25 + $0x68] sm:$0xff]  ;;  %v465_v22 = vld [vmem:[%s3623_s25 + $0x60] sm:$0xff]  ;;  %v2929_v46 = vld [vmem:[%s4136_s1 + $0x2b0] ss:$8 sps:$4 sm:$0xff]  }
  0x6b   : > { %1123 = vmatprep.subr.bf16.mxu1 %v2841_v29  ;;  %v458_v20 = vld [vmem:[%s3623_s25 + $0x28] sm:$0xff]  ;;  %v473_v27 = vpack.c.bf16 %v466_v19, %v459_v18  ;;  %v2907_v29 = vld [vmem:[%s4136_s1 + $0x234] ss:$8 sps:$4 sm:$0xff]   ;;  %v457_v53 = vld [vmem:[%s3623_s25 + $0x20] sm:$0xff] }
  0x6c   : > { %v472_v25 = vpack.c.bf16 %v465_v22, %v458_v20  ;;  %v2904_v26 = vld [vmem:[%s4136_s1 + $0x244] ss:$8 sps:$4 sm:$0xff]   ;;  %v2902_v28 = vld [vmem:[%s4136_s1 + $0x240] ss:$8 sps:$4 sm:$0xff]   ;;  %v2937_v49 = vld [vmem:[%s4136_s1 + $0x294] ss:$8 sps:$4 sm:$0xff]  }
  0x6d   : > { %1081 = vmatpush1.bf16.msra.mxu0 %v2843_v30  ;;  %v2905_v30 = vld [vmem:[%s4136_s1 + $0x230] ss:$8 sps:$4 sm:$0xff]   ;;  %v2934_v47 = vld [vmem:[%s4136_s1 + $0x2a4] ss:$8 sps:$4 sm:$0xff]   ;;  %v2932_v48 = vld [vmem:[%s4136_s1 + $0x2a0] ss:$8 sps:$4 sm:$0xff]  }
  0x6e   : > { %1124 = vmatpush1.bf16.msra.mxu1 %v2844_v31  ;;  %1082 = vmatprep.subr.bf16.mxu0 %v2845_v32  ;;  %v2910_v31 = vld [vmem:[%s4136_s1 + $0x224] ss:$8 sps:$4 sm:$0xff]   ;;  %v2908_v32 = vld [vmem:[%s4136_s1 + $0x220] ss:$8 sps:$4 sm:$0xff]   ;;  %v464_v54 = vld [vmem:[%s3623_s25 + $0x58] sm:$0xff]  ;;  %s3826_s25 = sand.u32 1, %s3296_s14  }
  0x6f   : > { %1125 = vmatprep.subr.bf16.mxu1 %v2847_v33  ;;  %v2913_v33 = vld [vmem:[%s4136_s1 + $0x214] ss:$8 sps:$4 sm:$0xff]   ;;  %v2965_v6 = vld [vmem:[#allocation2] ss:$8 sps:$4 sm:$0xff]   ;;  %v2967_v7 = vld [vmem:[#allocation2 + $0x4] ss:$8 sps:$4 sm:$0xff]  }
  0x70   : > { %v2970_v8 = vld [vmem:[#allocation2 + $0xf4] ss:$8 sps:$4 sm:$0xff]   ;;  %v2968_v9 = vld [vmem:[#allocation2 + $0xf0] ss:$8 sps:$4 sm:$0xff]   ;;  %v2985_v18 = vld [vmem:[#allocation2 + $0xa4] ss:$8 sps:$4 sm:$0xff]  }
  0x71   : > { %1083 = vmatpush2.bf16.msra.mxu0 %v2849_v34  ;;  %v2911_v34 = vld [vmem:[%s4136_s1 + $0x210] ss:$8 sps:$4 sm:$0xff]   ;;  %v2983_v19 = vld [vmem:[#allocation2 + $0xa0] ss:$8 sps:$4 sm:$0xff]   ;;  %v2988_v20 = vld [vmem:[#allocation2 + $0x94] ss:$8 sps:$4 sm:$0xff]  }
  0x72   : > { %1126 = vmatpush2.bf16.msra.mxu1 %v2850_v35  ;;  %1084 = vmatprep.subr.bf16.mxu0 %v2851_v36  ;;  %v2916_v35 = vld [vmem:[%s4136_s1 + $0x204] ss:$8 sps:$4 sm:$0xff]   ;;  %v2914_v36 = vld [vmem:[%s4136_s1 + $0x200] ss:$8 sps:$4 sm:$0xff]   ;;  %s2411_s28 = sshll.u32 %s3826_s25, 4  ;;  %s2413_s22 = sshll.u32 %s3826_s25, 3 }
  0x73   : > { %1127 = vmatprep.subr.bf16.mxu1 %v2853_v37  ;;  %v2919_v37 = vld [vmem:[%s4136_s1 + $0x2f4] ss:$8 sps:$4 sm:$0xff]   ;;  %v2991_v22 = vld [vmem:[#allocation2 + $0x84] ss:$8 sps:$4 sm:$0xff]   ;;  %s3838_s12 = scalar_lea.vmem [#allocation8], %s2411_s28  ;;  %s3880_s20 = scalar_lea.vmem [#allocation9], %s2411_s28 }
  0x74   : > { %s3930_s28 = scalar_lea.vmem [#allocation11], %s2413_s22  ;;  %s3943_s11 = scalar_lea.vmem [#allocation12], %s2413_s22 }
  0x75   : > { %1085 = vmatpush2.bf16.msra.mxu0 %v2855_v38  ;;  %v2917_v38 = vld [vmem:[%s4136_s1 + $0x2f0] ss:$8 sps:$4 sm:$0xff]   ;;  %s2154_s18 = sshll.u32 %s3880_s20, 4  ;;  %s3955_s18 = int_to_ptr.vmem [resolvable:$true] %s2154_s18 }
  0x76   : > { %1128 = vmatpush2.bf16.msra.mxu1 %v2856_v39  ;;  %1086 = vmatprep.subr.bf16.mxu0 %v2857_v40  ;;  %v2922_v39 = vld [vmem:[%s4136_s1 + $0x2e4] ss:$8 sps:$4 sm:$0xff]   ;;  %v2920_v40 = vld [vmem:[%s4136_s1 + $0x2e0] ss:$8 sps:$4 sm:$0xff]   ;;  %s3150_s3 = scalar_lea.vmem %s3955_s18, 256  ;;  %p3157_p7 = scmp.lt.s32.totalorder %s3955_s18, %s3155_s26 }
  0x77   : > { %1129 = vmatprep.subr.bf16.mxu1 %v2859_v41  ;;  %v2925_v41 = vld [vmem:[%s4136_s1 + $0x2d4] ss:$8 sps:$4 sm:$0xff]   ;;  %p3151_p10 = scmp.ne.s32.totalorder %s3955_s18, %s3150_s3 }
  0x79   : > { %1087 = vmatpush2.bf16.msra.mxu0 %v2861_v42  ;;  %v2923_v42 = vld [vmem:[%s4136_s1 + $0x2d0] ss:$8 sps:$4 sm:$0xff]   ;;  %p3152_p12 = pnand %p3151_p10, %p3419_p5 }
  0x7a   : > { %1130 = vmatpush2.bf16.msra.mxu1 %v2862_v43  ;;  %1088 = vmatprep.subr.bf16.mxu0 %v2863_v44  ;;  %v2928_v43 = vld [vmem:[%s4136_s1 + $0x2c4] ss:$8 sps:$4 sm:$0xff]   ;;  %v2926_v44 = vld [vmem:[%s4136_s1 + $0x2c0] ss:$8 sps:$4 sm:$0xff]  }
  0x7b   : > { %1131 = vmatprep.subr.bf16.mxu1 %v2865_v45  ;;  %v2931_v45 = vld [vmem:[%s4136_s1 + $0x2b4] ss:$8 sps:$4 sm:$0xff]   ;;  %p3153_p13 = pneg %p3152_p12 }
  0x7d   : > { %1089 = vmatpush2.bf16.msra.mxu0 %v2867_v50  ;;  %v2935_v50 = vld [vmem:[%s4136_s1 + $0x290] ss:$8 sps:$4 sm:$0xff]  }
  0x7e   : > { %1132 = vmatpush2.bf16.msra.mxu1 %v2868_v51  ;;  %1090 = vmatprep.subr.bf16.mxu0 %v2869_v52  ;;  %v2943_v51 = vld [vmem:[%s4136_s1 + $0x284] ss:$8 sps:$4 sm:$0xff]   ;;  %v2941_v52 = vld [vmem:[%s4136_s1 + $0x280] ss:$8 sps:$4 sm:$0xff]   ;;  %s3960_s1 = scalar_lea.hbm %s4113_s6, %s2615_s21 }
  0x7f   : > { %1133 = vmatprep.subr.bf16.mxu1 %v2871_v55  ;;  %v471_v55 = vpack.c.bf16 %v464_v54, %v457_v53 }
  0x81   : > { %1091 = vmatpush2.bf16.msra.mxu0 %v2873_v56  ;;  %v2944_v56 = vld [vmem:[#allocation2 + $0x70] ss:$8 sps:$4 sm:$0xff]  }
  0x82   : > { %1134 = vmatpush2.bf16.msra.mxu1 %v2874_v57  ;;  %1092 = vmatprep.subr.bf16.mxu0 %v2875_v58  ;;  %v2946_v57 = vld [vmem:[#allocation2 + $0x74] ss:$8 sps:$4 sm:$0xff]   ;;  %v2949_v58 = vld [vmem:[#allocation2 + $0x64] ss:$8 sps:$4 sm:$0xff]  }
  0x83   : > { %1135 = vmatprep.subr.bf16.mxu1 %v2877_v59  ;;  %v2947_v59 = vld [vmem:[#allocation2 + $0x60] ss:$8 sps:$4 sm:$0xff]  }
  0x85   : > { %1093 = vmatpush2.bf16.msra.mxu0 %v2879_v60  ;;  %v2952_v60 = vld [vmem:[#allocation2 + $0x54] ss:$8 sps:$4 sm:$0xff]  }
  0x86   : > { %1136 = vmatpush2.bf16.msra.mxu1 %v2880_v61  ;;  %1094 = vmatprep.subr.bf16.mxu0 %v2881_v62  ;;  %v2950_v61 = vld [vmem:[#allocation2 + $0x50] ss:$8 sps:$4 sm:$0xff]   ;;  %v2955_v62 = vld [vmem:[#allocation2 + $0x44] ss:$8 sps:$4 sm:$0xff]  }
  0x87   : > { %1137 = vmatprep.subr.bf16.mxu1 %v2883_v63  ;;  %v2953_v63 = vld [vmem:[#allocation2 + $0x40] ss:$8 sps:$4 sm:$0xff]  }
  0x89   : > { %1095 = vmatpush2.bf16.msra.mxu0 %v2885_v0  ;;  %v2958_v0 = vld [vmem:[#allocation2 + $0x34] ss:$8 sps:$4 sm:$0xff]  }
  0x8a   : > { %1138 = vmatpush2.bf16.msra.mxu1 %v2886_v1  ;;  %1096 = vmatprep.subr.bf16.mxu0 %v2887_v2  ;;  %v2956_v1 = vld [vmem:[#allocation2 + $0x30] ss:$8 sps:$4 sm:$0xff]   ;;  %v2961_v2 = vld [vmem:[#allocation2 + $0x24] ss:$8 sps:$4 sm:$0xff]  }
  0x8b   : > { %1139 = vmatprep.subr.bf16.mxu1 %v2889_v3  ;;  %v2959_v3 = vld [vmem:[#allocation2 + $0x20] ss:$8 sps:$4 sm:$0xff]  }
  0x8d   : > { %1097 = vmatpush2.bf16.msra.mxu0 %v2891_v4  ;;  %v2964_v4 = vld [vmem:[#allocation2 + $0x14] ss:$8 sps:$4 sm:$0xff]  }
  0x8e   : > { %1140 = vmatpush2.bf16.msra.mxu1 %v2892_v5  ;;  %1152 = vmatprep.subr.bf16.mxu0 %v2895_v10  ;;  %v2962_v5 = vld [vmem:[#allocation2 + $0x10] ss:$8 sps:$4 sm:$0xff]   ;;  %v2973_v10 = vld [vmem:[#allocation2 + $0xe4] ss:$8 sps:$4 sm:$0xff]  }
  0x8f   : > { %1209 = vmatprep.subr.bf16.mxu1 %v2940_v16  ;;  %v2982_v16 = vld [vmem:[#allocation2 + $0xb4] ss:$8 sps:$4 sm:$0xff]  }
  0x90   : > { %1099 = vmatmul.mubr.bf16.vlgmr.msra.gmra.mxu0 %v467_v11  ;;  %v2971_v11 = vld [vmem:[#allocation2 + $0xe0] ss:$8 sps:$4 sm:$0xff]  }
  0x91   : > { %1142 = vmatmul.mubr.bf16.vlgmr.msra.gmra.mxu1 %v469_v12  ;;  %1153 = vmatpush1.bf16.msra.mxu0 %v2893_v13  ;;  %v2976_v12 = vld [vmem:[#allocation2 + $0xd4] ss:$8 sps:$4 sm:$0xff]   ;;  %v2974_v13 = vld [vmem:[#allocation2 + $0xd0] ss:$8 sps:$4 sm:$0xff]  }
  0x92   : > { %1154 = vmatprep.subr.bf16.mxu0 %v2898_v14  ;;  %1210 = vmatpush1.bf16.msra.mxu1 %v2938_v15  ;;  %v2979_v14 = vld [vmem:[#allocation2 + $0xc4] ss:$8 sps:$4 sm:$0xff]   ;;  %v2977_v15 = vld [vmem:[#allocation2 + $0xc0] ss:$8 sps:$4 sm:$0xff]  }
  0x93   : > { %1227 = vmatprep.mubr.bf16.mxu1 %v3313_v24  ;;  %1184 = vmatprep.mubr.bf16.mxu0 %v472_v25 }
  0x94   : > { %1511 = vmatprep.subr.bf16.mxu1 %v2946_v57 }
  0x95   : > { %1155 = vmatpush1.bf16.msra.mxu0 %v2896_v17  ;;  %v2980_v17 = vld [vmem:[#allocation2 + $0xb0] ss:$8 sps:$4 sm:$0xff]  }
  0x96   : > { %1156 = vmatprep.subr.bf16.mxu0 %v2901_v21  ;;  %v2986_v21 = vld [vmem:[#allocation2 + $0x90] ss:$8 sps:$4 sm:$0xff]  }
  0x99   : > { %2517 = vmatmul.mubr.msk.bf16.vlgmr.msra.gmra.mxu1 %vm1062_vm0, %v473_v27  ;;  %1157 = vmatpush1.bf16.msra.mxu0 %v2899_v23  ;;  %v2989_v23 = vld [vmem:[#allocation2 + $0x80] ss:$8 sps:$4 sm:$0xff]  }
  0x9a   : > { %1158 = vmatprep.subr.bf16.mxu0 %v2904_v26  ;;  %1512 = vmatpush1.bf16.msra.mxu1 %v2944_v56 }
  0x9b   : > { %1513 = vmatprep.subr.bf16.mxu1 %v2949_v58 }
  0x9d   : > { %1159 = vmatpush1.bf16.msra.mxu0 %v2902_v28 }
  0x9e   : > { %1160 = vmatprep.subr.bf16.mxu0 %v2907_v29  ;;  %1514 = vmatpush1.bf16.msra.mxu1 %v2947_v59 }
  0x9f   : > { %1515 = vmatprep.subr.bf16.mxu1 %v2952_v60 }
  0xa1   : > { %1161 = vmatpush1.bf16.msra.mxu0 %v2905_v30 }
  0xa2   : > { %1162 = vmatprep.subr.bf16.mxu0 %v2910_v31  ;;  %1516 = vmatpush1.bf16.msra.mxu1 %v2950_v61 }
  0xa3   : > { %1517 = vmatprep.subr.bf16.mxu1 %v2955_v62 }
  0xa5   : > { %1163 = vmatpush1.bf16.msra.mxu0 %v2908_v32 }
  0xa6   : > { %1164 = vmatprep.subr.bf16.mxu0 %v2913_v33  ;;  %1518 = vmatpush1.bf16.msra.mxu1 %v2953_v63 }
  0xa7   : > { %1519 = vmatprep.subr.bf16.mxu1 %v2958_v0 }
  0xa9   : > { %1165 = vmatpush1.bf16.msra.mxu0 %v2911_v34 }
  0xaa   : > { %1166 = vmatprep.subr.bf16.mxu0 %v2916_v35  ;;  %1520 = vmatpush1.bf16.msra.mxu1 %v2956_v1 }
  0xab   : > { %1521 = vmatprep.subr.bf16.mxu1 %v2961_v2 }
  0xad   : > { %1167 = vmatpush1.bf16.msra.mxu0 %v2914_v36 }
  0xae   : > { %1168 = vmatprep.subr.bf16.mxu0 %v2919_v37  ;;  %1522 = vmatpush1.bf16.msra.mxu1 %v2959_v3 }
  0xaf   : > { %1523 = vmatprep.subr.bf16.mxu1 %v2964_v4 }
  0xb1   : > { %1169 = vmatpush2.bf16.msra.mxu0 %v2917_v38 }
  0xb2   : > { %1170 = vmatprep.subr.bf16.mxu0 %v2922_v39  ;;  %1524 = vmatpush1.bf16.msra.mxu1 %v2962_v5 }
  0xb3   : > { %1525 = vmatprep.subr.bf16.mxu1 %v2967_v7 }
  0xb5   : > { %1171 = vmatpush2.bf16.msra.mxu0 %v2920_v40 }
  0xb6   : > { %1172 = vmatprep.subr.bf16.mxu0 %v2925_v41  ;;  %1526 = vmatpush1.bf16.msra.mxu1 %v2965_v6 }
  0xb7   : > { %1527 = vmatprep.subr.bf16.mxu1 %v2970_v8 }
  0xb9   : > { %1173 = vmatpush2.bf16.msra.mxu0 %v2923_v42 }
  0xba   : > { %1174 = vmatprep.subr.bf16.mxu0 %v2928_v43  ;;  %1528 = vmatpush2.bf16.msra.mxu1 %v2968_v9 }
  0xbb   : > { %1529 = vmatprep.subr.bf16.mxu1 %v2973_v10 }
  0xbd   : > { %1175 = vmatpush2.bf16.msra.mxu0 %v2926_v44 }
  0xbe   : > { %1176 = vmatprep.subr.bf16.mxu0 %v2931_v45  ;;  %1530 = vmatpush2.bf16.msra.mxu1 %v2971_v11 }
  0xbf   : > { %1531 = vmatprep.subr.bf16.mxu1 %v2976_v12 }
  0xc1   : > { %1177 = vmatpush2.bf16.msra.mxu0 %v2929_v46 }
  0xc2   : > { %1178 = vmatprep.subr.bf16.mxu0 %v2934_v47  ;;  %1532 = vmatpush2.bf16.msra.mxu1 %v2974_v13 }
  0xc3   : > { %1533 = vmatprep.subr.bf16.mxu1 %v2979_v14 }
  0xc5   : > { %1179 = vmatpush2.bf16.msra.mxu0 %v2932_v48 }
  0xc6   : > { %1180 = vmatprep.subr.bf16.mxu0 %v2937_v49  ;;  %1534 = vmatpush2.bf16.msra.mxu1 %v2977_v15 }
  0xc7   : > { %1535 = vmatprep.subr.bf16.mxu1 %v2982_v16 }
  0xc9   : > { %1181 = vmatpush2.bf16.msra.mxu0 %v2935_v50 }
  0xca   : > { %1182 = vmatprep.subr.bf16.mxu0 %v2943_v51  ;;  %1536 = vmatpush2.bf16.msra.mxu1 %v2980_v17 }
  0xcb   : > { %1537 = vmatprep.subr.bf16.mxu1 %v2985_v18 }
  0xcd   : > { %1183 = vmatpush2.bf16.msra.mxu0 %v2941_v52 }
  0xce   : > { %1538 = vmatpush2.bf16.msra.mxu1 %v2983_v19 }
  0xcf   : > { %1539 = vmatprep.subr.bf16.mxu1 %v2988_v20 }
  0xd0   : > { %1185 = vmatmul.mubr.bf16.vlgmr.msra.gmra.mxu0 %v471_v55 }
  0xd2   : > { %1540 = vmatpush2.bf16.msra.mxu1 %v2986_v21 }
  0xd3   : > { %1541 = vmatprep.subr.bf16.mxu1 %v2991_v22 }
  0xd6   : > { %1542 = vmatpush2.bf16.msra.mxu1 %v2989_v23 }
 0x150   : > { %v1100_v25 = vpop.f32.mrf.mxu0 }
 0x151   : > { %v1143_v24 = vpop.f32.mrf.mxu1 }
 0x152   : > { %v1102_v27 = vpop.f32.mrf.mxu0  ;;  %v1144_v33 = vadd.f32 %v1143_v24, %v1100_v25 }
 0x153   : > { %v1145_v26 = vpop.f32.mrf.mxu1 }
 0x154   : > { %v1104_v29 = vpop.f32.mrf.mxu0  ;;  %v1146_v35 = vadd.f32 %v1145_v26, %v1102_v27 }
 0x155   : > { %v1147_v28 = vpop.f32.mrf.mxu1 }
 0x156   : > { %v1106_v32 = vpop.f32.mrf.mxu0  ;;  %v1148_v39 = vadd.f32 %v1147_v28, %v1104_v29 }
 0x157   : > { %v1149_v30 = vpop.f32.mrf.mxu1 }
 0x158   : > { %v1150_v47 = vadd.f32 %v1149_v30, %v1106_v32 }
 0x159   : > { %v1229_v31 = vpop.f32.mrf.mxu1 }
 0x15b   : > { %v1231_v36 = vpop.f32.mrf.mxu1 }
 0x15d   : > { %v1233_v44 = vpop.f32.mrf.mxu1 }
 0x15f   : > { %v1235_v55 = vpop.f32.mrf.mxu1 }
 0x190   : > { %v1186_v34 = vpop.f32.mrf.mxu0 }
 0x191   : > { %v1187_v37 = vadd.f32 %v1186_v34, %v1144_v33 }
 0x192   : > { %v1188_v38 = vpop.f32.mrf.mxu0 }
 0x193   : > { %v3801_v40 = vadd.f32 %v1229_v31, %v1187_v37  ;;  %v1189_v41 = vadd.f32 %v1188_v38, %v1146_v35 }
 0x194   : > { %v1190_v42 = vpop.f32.mrf.mxu0 }
 0x195   : > { %v3804_v43 = vmul.f32 10.0, %v3801_v40  ;;  %v3806_v45 = vadd.f32 %v1231_v36, %v1189_v41  ;;  %v1191_v46 = vadd.f32 %v1190_v42, %v1148_v39 }
 0x196   : > { %v1192_v48 = vpop.f32.mrf.mxu0 }
 0x197   : > { %v1242_v49 = vmin.f32 %v3804_v43, 20.0  ;;  %v3810_v50 = vmul.f32 10.0, %v3806_v45  ;;  %v3812_v51 = vadd.f32 %v1233_v44, %v1191_v46  ;;  %v1193_v52 = vadd.f32 %v1192_v48, %v1150_v47  ;;  %v2992_v48 = vld [vmem:[#allocation5 + $0x78] sm:$0xff]  }
 0x198   : > { %vm1294_vm6 = vcmp.gt.f32.partialorder %v3804_v43, 20.0  ;;  %2620 = vmatprep.subr.bf16.mxu0 %v2992_v48 }
 0x199   : > { %v1246_v53 = vmul.f32 1.442695, %v1242_v49  ;;  %v1243_v54 = vmin.f32 %v3810_v50, 20.0  ;;  %v3816_v56 = vmul.f32 10.0, %v3812_v51  ;;  %v3818_v57 = vadd.f32 %v1235_v55, %v1193_v52  ;;  %v2993_v49 = vld [vmem:[#allocation5 + $0x38] sm:$0xff]   ;;  %v2995_v52 = vld [vmem:[#allocation5 + $0x30] sm:$0xff]  }
 0x19a   : > { %vm1295_vm7 = vcmp.gt.f32.partialorder %v3810_v50, 20.0  ;;  %2621 = vmatpush3.bf16.msra.mxu0 %v2993_v49  ;;  %v2994_v50 = vld [vmem:[#allocation5 + $0x70] sm:$0xff]   ;;  %v2999_v55 = vld [vmem:[#allocation5 + $0x20] sm:$0xff]  }
 0x19b   : > { %3024 = vpow2.f32 %v1246_v53  ;;  %v1248_v58 = vmul.f32 1.442695, %v1243_v54  ;;  %v1244_v59 = vmin.f32 %v3816_v56, 20.0  ;;  %v3822_v60 = vmul.f32 10.0, %v3818_v57  ;;  %2622 = vmatprep.subr.bf16.mxu0 %v2994_v50  ;;  %v2996_v53 = vld [vmem:[#allocation5 + $0x68] sm:$0xff]  }
 0x19c   : > { %vm1296_vm10 = vcmp.gt.f32.partialorder %v3816_v56, 20.0  ;;  %v2997_v54 = vld [vmem:[#allocation5 + $0x28] sm:$0xff]   ;;  %v3000_v56 = vld [vmem:[#allocation5 + $0x58] sm:$0xff]  }
 0x19d   : > { %3026 = vpow2.f32 %v1248_v58  ;;  %v1250_v61 = vmul.f32 1.442695, %v1244_v59  ;;  %v1245_v62 = vmin.f32 %v3822_v60, 20.0  ;;  %vm1297_vm11 = vcmp.gt.f32.partialorder %v3822_v60, 20.0  ;;  %v3002_v58 = vld [vmem:[#allocation5 + $0x50] sm:$0xff]   ;;  %v3004_v60 = vld [vmem:[#allocation5 + $0x48] sm:$0xff]  }
 0x19e   : > { %2623 = vmatpush3.bf16.msra.mxu0 %v2995_v52  ;;  %v3003_v59 = vld [vmem:[#allocation5 + $0x10] sm:$0xff]  }
 0x19f   : > { %3028 = vpow2.f32 %v1250_v61  ;;  %v1252_v63 = vmul.f32 1.442695, %v1245_v62  ;;  %2624 = vmatprep.subr.bf16.mxu0 %v2996_v53  ;;  %v3005_v61 = vld [vmem:[#allocation5 + $0x8] sm:$0xff]   ;;  %v3006_v62 = vld [vmem:[#allocation5 + $0x40] sm:$0xff]  }
 0x1a1   : > { %3030 = vpow2.f32 %v1252_v63  ;;  %v3007_v63 = vld [vmem:[#allocation5] sm:$0xff]  }
 0x1a2   : > { %2625 = vmatpush3.bf16.msra.mxu0 %v2997_v54 }
 0x1a8   : > { %v3025_v0 = vpop.eup %3024 }
 0x1a9   : > { %v1254_v1 = vadd.f32 1.0, %v3025_v0  ;;  %v1257_v8 = vmul.f32 -0.5, %v3025_v0  ;;  %v1260_v12 = vand.u32 2147483647, %v3025_v0 }
 0x1aa   : > { %v3027_v2 = vpop.eup %3026 }
 0x1ab   : > { %3032 = vlog2.f32 %v1254_v1  ;;  %v1263_v3 = vadd.f32 1.0, %v3027_v2  ;;  %v1266_v9 = vmul.f32 -0.5, %v3027_v2  ;;  %v1258_v10 = vadd.f32 1.0, %v1257_v8 }
 0x1ac   : > { %v3029_v4 = vpop.eup %3028  ;;  %v1269_v16 = vand.u32 2147483647, %v3027_v2  ;;  %vm1261_vm1 = vcmp.lt.f32.partialorder %v1260_v12, 0.0004427343 }
 0x1ad   : > { %3034 = vlog2.f32 %v1263_v3  ;;  %v1272_v5 = vadd.f32 1.0, %v3029_v4  ;;  %v1275_v11 = vmul.f32 -0.5, %v3029_v4  ;;  %v1267_v13 = vadd.f32 1.0, %v1266_v9 }
 0x1ae   : > { %v3031_v6 = vpop.eup %3030  ;;  %v1259_v18 = vmul.f32 %v3025_v0, %v1258_v10  ;;  %v1278_v21 = vand.u32 2147483647, %v3029_v4  ;;  %vm1270_vm2 = vcmp.lt.f32.partialorder %v1269_v16, 0.0004427343 }
 0x1af   : > { %3036 = vlog2.f32 %v1272_v5  ;;  %v1281_v7 = vadd.f32 1.0, %v3031_v6  ;;  %v1284_v14 = vmul.f32 -0.5, %v3031_v6  ;;  %v1276_v19 = vadd.f32 1.0, %v1275_v11 }
 0x1b0   : > { %v1268_v24 = vmul.f32 %v3027_v2, %v1267_v13  ;;  %v1287_v31 = vand.u32 2147483647, %v3031_v6  ;;  %vm1279_vm5 = vcmp.lt.f32.partialorder %v1278_v21, 0.0004427343 }
 0x1b1   : > { %3038 = vlog2.f32 %v1281_v7  ;;  %v1285_v25 = vadd.f32 1.0, %v1284_v14  ;;  %v1277_v30 = vmul.f32 %v3029_v4, %v1276_v19 }
 0x1b2   : > { %vm1288_vm9 = vcmp.lt.f32.partialorder %v1287_v31, 0.0004427343 }
 0x1b3   : > { %v1286_v35 = vmul.f32 %v3031_v6, %v1285_v25 }
 0x1b8   : > { %v3033_v15 = vpop.eup %3032 }
 0x1b9   : > { %v1256_v17 = vmul.f32 0.6931472, %v3033_v15 }
 0x1ba   : > { %v3035_v20 = vpop.eup %3034 }
 0x1bb   : > { %v1262_v22 = vsel %vm1261_vm1, %v1259_v18, %v1256_v17  ;;  %v1265_v23 = vmul.f32 0.6931472, %v3035_v20 }
 0x1bc   : > { %v3037_v26 = vpop.eup %3036  ;;  %v1290_v27 = vmul.f32 0.1, %v1262_v22 }
 0x1bd   : > { %v1271_v28 = vsel %vm1270_vm2, %v1268_v24, %v1265_v23  ;;  %v1274_v29 = vmul.f32 0.6931472, %v3037_v26  ;;  %vm3874_vm2 = vmor %vm1630_vm14, %vm1314_vm3  ;;  %vm1991_vm14 = vcmask 568320  }
 0x1be   : > { %v1291_v32 = vmul.f32 0.1, %v1271_v28  ;;  %v3039_v33 = vpop.eup %3038  ;;  %v1298_v38 = vsel %vm1294_vm6, %v3801_v40, %v1290_v27  ;;  %vm3315_vm6 = vmmov 0  }
 0x1bf   : > { %v1280_v34 = vsel %vm1279_vm5, %v1277_v30, %v1274_v29  ;;  %v1283_v36 = vmul.f32 0.6931472, %v3039_v33 }
 0x1c0   : > { %v1292_v37 = vmul.f32 0.1, %v1280_v34  ;;  %v1299_v39 = vsel %vm1295_vm7, %v3806_v45, %v1291_v32 }
 0x1c1   : > { %v2606_v41 = vpack.c.bf16 %v1299_v39, %v1298_v38  ;;  %v1289_v42 = vsel %vm1288_vm9, %v1286_v35, %v1283_v36  ;;  %vm1843_vm9 = vcmask 814080  }
 0x1c2   : > { %v1293_v44 = vmul.f32 0.1, %v1289_v42  ;;  %v1300_v40 = vsel %vm1296_vm10, %v3812_v51, %v1292_v37  ;;  %v2998_v51 = vld [vmem:[#allocation5 + $0x60] sm:$0xff]  }
 0x1c3   : > { %1317 = vst.msk [vmem:[%s3838_s12] sm:$0xff] %vm1316_vm8, %v2606_v41  ;;  %v1302_v47 = vpack.c.bf16 %v1300_v40, %v1298_v38  ;;  %2626 = vmatprep.subr.bf16.mxu0 %v2998_v51  ;;  %v3023_v51 = vld [vmem:[#allocation7] sm:$0xff]  }
 0x1c4   : > { %v1301_v43 = vsel %vm1297_vm11, %v3818_v57, %v1293_v44  ;;  %2627 = vmatpush3.bf16.msra.mxu0 %v2999_v55  ;;  %v3001_v57 = vld [vmem:[#allocation5 + $0x18] sm:$0xff]  }
 0x1c5   : > { %v1303_v45 = vpack.c.bf16 %v1301_v43, %v1299_v39  ;;  %v2607_v46 = vpack.c.bf16 %v1301_v43, %v1300_v40  ;;  %2628 = vmatprep.subr.bf16.mxu0 %v3000_v56 }
 0x1c7   : > { %1318 = vst.msk [vmem:[%s3838_s12 + $0x8] sm:$0xff] %vm1316_vm8, %v2607_v46  ;;  %1543 = vmatprep.mubr.bf16.mxu1 %v1303_v45 }
 0x1c8   : > { %1544 = vmatmul.mubr.bf16.vlgmr.msra.gmra.mxu1 %v1302_v47  ;;  %2629 = vmatpush3.bf16.msra.mxu0 %v3001_v57 }
 0x1c9   : > { %2630 = vmatprep.subr.bf16.mxu0 %v3002_v58 }
 0x1cc   : > { %2631 = vmatpush3.bf16.msra.mxu0 %v3003_v59 }
 0x1cd   : > { %2632 = vmatprep.subr.bf16.mxu0 %v3004_v60 }
 0x1d0   : > { %2633 = vmatpush3.bf16.msra.mxu0 %v3005_v61 }
 0x1d1   : > { %2634 = vmatprep.subr.bf16.mxu0 %v3006_v62 }
 0x1d4   : > { %2635 = vmatpush3.bf16.msra.mxu0 %v3007_v63 }
 0x288   : > { %v3845_v0 = vpop.f32.mrf.mxu1 }
 0x289   : > { %v3848_v1 = vmul.f32 10.0, %v3845_v0 }
 0x28a   : > { %v3850_v2 = vpop.f32.mrf.mxu1 }
 0x28b   : > { %v1558_v3 = vmin.f32 %v3848_v1, 20.0  ;;  %v3854_v4 = vmul.f32 10.0, %v3850_v2  ;;  %vm1610_vm0 = vcmp.gt.f32.partialorder %v3848_v1, 20.0  ;;  %v3008_v1 = vld [vmem:[%s4140_s4 + $0x38] sm:$0xff]  }
 0x28c   : > { %v3856_v5 = vpop.f32.mrf.mxu1 }
 0x28d   : > { %v1562_v6 = vmul.f32 1.442695, %v1558_v3  ;;  %v1559_v7 = vmin.f32 %v3854_v4, 20.0  ;;  %v3860_v8 = vmul.f32 10.0, %v3856_v5  ;;  %vm1611_vm1 = vcmp.gt.f32.partialorder %v3854_v4, 20.0  ;;  %v3009_v3 = vld [vmem:[%s4140_s4 + $0x30] sm:$0xff]  }
 0x28e   : > { %v3862_v9 = vpop.f32.mrf.mxu1  ;;  %v3010_v4 = vld [vmem:[%s4140_s4 + $0x28] sm:$0xff]  }
 0x28f   : > { %3040 = vpow2.f32 %v1562_v6  ;;  %v1564_v10 = vmul.f32 1.442695, %v1559_v7  ;;  %v1560_v11 = vmin.f32 %v3860_v8, 20.0  ;;  %v3866_v12 = vmul.f32 10.0, %v3862_v9  ;;  %v3012_v6 = vld [vmem:[%s4140_s4 + $0x18] sm:$0xff]   ;;  %v3013_v7 = vld [vmem:[%s4140_s4 + $0x10] sm:$0xff]  }
 0x290   : > { %vm1612_vm5 = vcmp.gt.f32.partialorder %v3860_v8, 20.0  ;;  %v3014_v8 = vld [vmem:[%s4140_s4 + $0x8] sm:$0xff]  }
 0x291   : > { %3042 = vpow2.f32 %v1564_v10  ;;  %v1566_v13 = vmul.f32 1.442695, %v1560_v11  ;;  %v1561_v14 = vmin.f32 %v3866_v12, 20.0  ;;  %vm1613_vm3 = vcmp.gt.f32.partialorder %v3866_v12, 20.0 }
 0x293   : > { %3044 = vpow2.f32 %v1566_v13  ;;  %v1568_v15 = vmul.f32 1.442695, %v1561_v14 }
 0x295   : > { %3046 = vpow2.f32 %v1568_v15 }
 0x29c   : > { %v3041_v16 = vpop.eup %3040 }
 0x29d   : > { %v1570_v17 = vadd.f32 1.0, %v3041_v16  ;;  %v1573_v24 = vmul.f32 -0.5, %v3041_v16  ;;  %v1576_v28 = vand.u32 2147483647, %v3041_v16 }
 0x29e   : > { %v3043_v18 = vpop.eup %3042 }
 0x29f   : > { %3048 = vlog2.f32 %v1570_v17  ;;  %v1579_v19 = vadd.f32 1.0, %v3043_v18  ;;  %v1582_v25 = vmul.f32 -0.5, %v3043_v18  ;;  %v1574_v26 = vadd.f32 1.0, %v1573_v24 }
 0x2a0   : > { %v3045_v20 = vpop.eup %3044  ;;  %v1585_v32 = vand.u32 2147483647, %v3043_v18  ;;  %vm1577_vm12 = vcmp.lt.f32.partialorder %v1576_v28, 0.0004427343 }
 0x2a1   : > { %3050 = vlog2.f32 %v1579_v19  ;;  %v1588_v21 = vadd.f32 1.0, %v3045_v20  ;;  %v1591_v27 = vmul.f32 -0.5, %v3045_v20  ;;  %v1583_v29 = vadd.f32 1.0, %v1582_v25 }
 0x2a2   : > { %v3047_v22 = vpop.eup %3046  ;;  %v1575_v34 = vmul.f32 %v3041_v16, %v1574_v26  ;;  %v1594_v37 = vand.u32 2147483647, %v3045_v20  ;;  %vm1586_vm13 = vcmp.lt.f32.partialorder %v1585_v32, 0.0004427343 }
 0x2a3   : > { %3052 = vlog2.f32 %v1588_v21  ;;  %v1597_v23 = vadd.f32 1.0, %v3047_v22  ;;  %v1600_v30 = vmul.f32 -0.5, %v3047_v22  ;;  %v1592_v35 = vadd.f32 1.0, %v1591_v27 }
 0x2a4   : > { %v1584_v41 = vmul.f32 %v3043_v18, %v1583_v29  ;;  %v1603_v47 = vand.u32 2147483647, %v3047_v22  ;;  %vm1595_vm15 = vcmp.lt.f32.partialorder %v1594_v37, 0.0004427343 }
 0x2a5   : > { %3054 = vlog2.f32 %v1597_v23  ;;  %v1601_v42 = vadd.f32 1.0, %v1600_v30  ;;  %v1593_v46 = vmul.f32 %v3045_v20, %v1592_v35 }
 0x2a6   : > { %vm1604_vm4 = vcmp.lt.f32.partialorder %v1603_v47, 0.0004427343  ;;  %v3016_v47 = vld [vmem:[#allocation7 + $0x38] sm:$0xff]  }
 0x2a7   : > { %v1602_v52 = vmul.f32 %v3047_v22, %v1601_v42 }
 0x2ac   : > { %v3049_v31 = vpop.eup %3048 }
 0x2ad   : > { %v1572_v33 = vmul.f32 0.6931472, %v3049_v31 }
 0x2ae   : > { %v3051_v36 = vpop.eup %3050 }
 0x2af   : > { %v1578_v38 = vsel %vm1577_vm12, %v1575_v34, %v1572_v33  ;;  %v1581_v39 = vmul.f32 0.6931472, %v3051_v36 }
 0x2b0   : > { %v3053_v44 = vpop.eup %3052  ;;  %v1606_v40 = vmul.f32 0.1, %v1578_v38 }
 0x2b1   : > { %v1587_v43 = vsel %vm1586_vm13, %v1584_v41, %v1581_v39  ;;  %v1590_v45 = vmul.f32 0.6931472, %v3053_v44 }
 0x2b2   : > { %v1607_v48 = vmul.f32 0.1, %v1587_v43  ;;  %v3055_v49 = vpop.eup %3054  ;;  %v1614_v53 = vsel %vm1610_vm0, %v3845_v0, %v1606_v40 }
 0x2b3   : > { %v1596_v50 = vsel %vm1595_vm15, %v1593_v46, %v1590_v45  ;;  %v1599_v56 = vmul.f32 0.6931472, %v3055_v49  ;;  %v3018_v49 = vld [vmem:[#allocation7 + $0x28] sm:$0xff]  }
 0x2b4   : > { %v1615_v54 = vsel %vm1611_vm1, %v3850_v2, %v1607_v48  ;;  %v1608_v55 = vmul.f32 0.1, %v1596_v50  ;;  %v3314_v2 = vmov 0.0   ;;  %v3017_v48 = vld [vmem:[#allocation7 + $0x30] sm:$0xff]   ;;  %v3019_v50 = vld [vmem:[#allocation7 + $0x20] sm:$0xff]  }
 0x2b5   : > { %v2608_v57 = vpack.c.bf16 %v1615_v54, %v1614_v53  ;;  %v1605_v58 = vsel %vm1604_vm4, %v1602_v52, %v1599_v56  ;;  %2660 = vmatprep.subr.bf16.mxu1 %v3314_v2  ;;  %2680 = vmatprep.subr.bf16.mxu0 %v3314_v2  ;;  %v3020_v52 = vld [vmem:[#allocation7 + $0x18] sm:$0xff]  }
 0x2b6   : > { %v1609_v59 = vmul.f32 0.1, %v1605_v58  ;;  %v1616_v60 = vsel %vm1612_vm5, %v3856_v5, %v1608_v55  ;;  %2661 = vmatpush3.bf16.msra.mxu1 %v3008_v1  ;;  %v3011_v5 = vld [vmem:[%s4140_s4 + $0x20] sm:$0xff]   ;;  %2676 = vmatprep.mubr.msk.bf16.mxu1 %vm3315_vm6, %v3314_v2 }
 0x2b7   : > { %1632 = vst.msk [vmem:[%s3880_s20] sm:$0xff] %vm3874_vm2, %v2608_v57  ;;  %v1618_v0 = vpack.c.bf16 %v1616_v60, %v1614_v53  ;;  %2662 = vmatprep.subr.bf16.mxu1 %v3314_v2  ;;  %v3021_v53 = vld [vmem:[#allocation7 + $0x10] sm:$0xff]  }
 0x2b8   : > { %v1617_v61 = vsel %vm1613_vm3, %v3862_v9, %v1609_v59  ;;  %v3015_v9 = vld [vmem:[%s4140_s4] sm:$0xff]  }
 0x2b9   : > { %v1619_v62 = vpack.c.bf16 %v1617_v61, %v1615_v54  ;;  %v2609_v63 = vpack.c.bf16 %v1617_v61, %v1616_v60  ;;  %v3022_v54 = vld [vmem:[#allocation7 + $0x8] sm:$0xff]  }
 0x2ba   : > { %2663 = vmatpush3.bf16.msra.mxu1 %v3009_v3 }
 0x2bb   : > { %1633 = vst.msk [vmem:[%s3880_s20 + $0x8] sm:$0xff] %vm3874_vm2, %v2609_v63  ;;  %1794 = vmatprep.mubr.bf16.mxu0 %v1619_v62  ;;  %2664 = vmatprep.subr.bf16.mxu1 %v3314_v2  ;;  %s3156_s20 = scalar_lea.vmem %s3155_s26, 512 }
 0x2bc   : > { %1795 = vmatmul.mubr.bf16.vlgmr.msra.gmra.mxu0 %v1618_v0  ;;  %p3158_p8 = scmp.lt.s32.totalorder %s3156_s20, %s3150_s3 }
 0x2bd   : > { %2696 = vmatprep.mubr.msk.bf16.mxu0 %vm3315_vm6, %v3314_v2  ;;  %2681 = vmatpush3.bf16.msra.mxu0 %v3016_v47 }
 0x2be   : > { %2665 = vmatpush3.bf16.msra.mxu1 %v3010_v4  ;;  %2682 = vmatprep.subr.bf16.mxu0 %v3314_v2  ;;  %p3159_p11 = por %p3158_p8, %p3157_p7 }
 0x2bf   : > { %2666 = vmatprep.subr.bf16.mxu1 %v3314_v2 }
 0x2c0   : > { %p3160_p0 = pnand %p3159_p11, %p3153_p13 }
 0x2c1   : > { %2683 = vmatpush3.bf16.msra.mxu0 %v3017_v48 }
 0x2c2   : > { %2667 = vmatpush3.bf16.msra.mxu1 %v3011_v5  ;;  %2684 = vmatprep.subr.bf16.mxu0 %v3314_v2 }
 0x2c3   : > { %2668 = vmatprep.subr.bf16.mxu1 %v3314_v2 }
 0x2c5   : > { %2685 = vmatpush3.bf16.msra.mxu0 %v3018_v49 }
 0x2c6   : > { %2669 = vmatpush3.bf16.msra.mxu1 %v3012_v6  ;;  %2686 = vmatprep.subr.bf16.mxu0 %v3314_v2 }
 0x2c7   : > { %2670 = vmatprep.subr.bf16.mxu1 %v3314_v2 }
 0x2c9   : > { %2687 = vmatpush3.bf16.msra.mxu0 %v3019_v50 }
 0x2ca   : > { %2671 = vmatpush3.bf16.msra.mxu1 %v3013_v7  ;;  %2688 = vmatprep.subr.bf16.mxu0 %v3314_v2 }
 0x2cb   : > { %2672 = vmatprep.subr.bf16.mxu1 %v3314_v2 }
 0x2cd   : > { %2689 = vmatpush3.bf16.msra.mxu0 %v3020_v52 }
 0x2ce   : > { %2673 = vmatpush3.bf16.msra.mxu1 %v3014_v8  ;;  %2690 = vmatprep.subr.bf16.mxu0 %v3314_v2 }
 0x2cf   : > { %2674 = vmatprep.subr.bf16.mxu1 %v3314_v2 }
 0x2d1   : > { %2691 = vmatpush3.bf16.msra.mxu0 %v3021_v53 }
 0x2d2   : > { %2675 = vmatpush3.bf16.msra.mxu1 %v3015_v9  ;;  %2692 = vmatprep.subr.bf16.mxu0 %v3314_v2 }
 0x2d5   : > { %2693 = vmatpush3.bf16.msra.mxu0 %v3022_v54 }
 0x2d6   : > { %2694 = vmatprep.subr.bf16.mxu0 %v3314_v2 }
 0x2d9   : > { %2695 = vmatpush3.bf16.msra.mxu0 %v3023_v51 }
 0x37c   : > { %v2636_v10 = vpop.f32.mrf.mxu0 }
 0x37e   : > { %v2637_v11 = vpop.f32.mrf.mxu0 }
 0x37f   : > { %v2638_v12 = vadd.f32 %v2637_v11, %v2636_v10 }
 0x380   : > { %v2639_v13 = vpop.f32.mrf.mxu0 }
 0x381   : > { %v1803_v14 = vmul.f32 10.0, %v2638_v12 }
 0x382   : > { %v2640_v15 = vpop.f32.mrf.mxu0 }
 0x383   : > { %v1805_v16 = vmin.f32 %v1803_v14, 20.0  ;;  %v2641_v17 = vadd.f32 %v2640_v15, %v2639_v13  ;;  %vm1831_vm8 = vcmp.gt.f32.partialorder %v1803_v14, 20.0 }
 0x385   : > { %v1807_v18 = vmul.f32 1.442695, %v1805_v16  ;;  %v1804_v19 = vmul.f32 10.0, %v2641_v17 }
 0x387   : > { %3056 = vpow2.f32 %v1807_v18  ;;  %v1806_v20 = vmin.f32 %v1804_v19, 20.0  ;;  %vm1832_vm11 = vcmp.gt.f32.partialorder %v1804_v19, 20.0 }
 0x389   : > { %v1809_v21 = vmul.f32 1.442695, %v1806_v20 }
 0x38b   : > { %3058 = vpow2.f32 %v1809_v21 }
 0x394   : > { %v3057_v22 = vpop.eup %3056 }
 0x395   : > { %v1811_v23 = vadd.f32 1.0, %v3057_v22  ;;  %v1814_v26 = vmul.f32 -0.5, %v3057_v22  ;;  %v1817_v29 = vand.u32 2147483647, %v3057_v22 }
 0x397   : > { %3060 = vlog2.f32 %v1811_v23  ;;  %v1815_v27 = vadd.f32 1.0, %v1814_v26  ;;  %vm1818_vm7 = vcmp.lt.f32.partialorder %v1817_v29, 0.0004427343 }
 0x398   : > { %v3059_v24 = vpop.eup %3058 }
 0x399   : > { %v1820_v25 = vadd.f32 1.0, %v3059_v24  ;;  %v1823_v28 = vmul.f32 -0.5, %v3059_v24  ;;  %v1816_v32 = vmul.f32 %v3057_v22, %v1815_v27  ;;  %v1826_v34 = vand.u32 2147483647, %v3059_v24 }
 0x39b   : > { %3062 = vlog2.f32 %v1820_v25  ;;  %v1824_v33 = vadd.f32 1.0, %v1823_v28  ;;  %vm1827_vm10 = vcmp.lt.f32.partialorder %v1826_v34, 0.0004427343 }
 0x39d   : > { %v1825_v39 = vmul.f32 %v3059_v24, %v1824_v33 }
 0x3a4   : > { %v3061_v30 = vpop.eup %3060 }
 0x3a5   : > { %v1813_v31 = vmul.f32 0.6931472, %v3061_v30 }
 0x3a7   : > { %v1819_v35 = vsel %vm1818_vm7, %v1816_v32, %v1813_v31 }
 0x3a8   : > { %v3063_v36 = vpop.eup %3062  ;;  %v1829_v37 = vmul.f32 0.1, %v1819_v35 }
 0x3a9   : > { %v1822_v38 = vmul.f32 0.6931472, %v3063_v36 }
 0x3aa   : > { %v1833_v41 = vsel %vm1831_vm8, %v2638_v12, %v1829_v37 }
 0x3ab   : > { %v2610_v42 = vpack.c.bf16 %v1833_v41, %v1833_v41  ;;  %v1828_v44 = vsel %vm1827_vm10, %v1825_v39, %v1822_v38 }
 0x3ac   : > { %v1830_v40 = vmul.f32 0.1, %v1828_v44 }
 0x3ad   : > { %1844 = vst.msk [vmem:[%s3930_s28] sm:$0xf] %vm1843_vm9, %v2610_v42 }
 0x3ae   : > { %v1834_v43 = vsel %vm1832_vm11, %v2641_v17, %v1830_v40 }
 0x3af   : > { %v1835_v45 = vpack.c.bf16 %v1834_v43, %v1833_v41  ;;  %v2611_v46 = vpack.c.bf16 %v1834_v43, %v1834_v43 }
 0x3b1   : > { %1845 = vst.msk [vmem:[%s3930_s28 + $0x4] sm:$0xf] %vm1843_vm9, %v2611_v46  ;;  %2677 = vmatmul.mubr.bf16.vlgmr.msra.gmra.mxu1 %v1835_v45 }
 0x471   : > { %v1944_v55 = vpop.f32.mrf.mxu1 }
 0x472   : > { %v1951_v56 = vmul.f32 10.0, %v1944_v55 }
 0x473   : > { %v2678_v57 = vpop.f32.mrf.mxu1 }
 0x474   : > { %v1953_v58 = vmin.f32 %v1951_v56, 20.0  ;;  %vm1979_vm13 = vcmp.gt.f32.partialorder %v1951_v56, 20.0 }
 0x475   : > { %v1947_v59 = vpop.f32.mrf.mxu1 }
 0x476   : > { %v1955_v60 = vmul.f32 1.442695, %v1953_v58  ;;  %v1952_v61 = vmul.f32 10.0, %v1947_v59 }
 0x477   : > { %v2679_v62 = vpop.f32.mrf.mxu1 }
 0x478   : > { %3064 = vpow2.f32 %v1955_v60  ;;  %v1954_v63 = vmin.f32 %v1952_v61, 20.0  ;;  %vm1980_vm0 = vcmp.gt.f32.partialorder %v1952_v61, 20.0 }
 0x47a   : > { %v1957_v0 = vmul.f32 1.442695, %v1954_v63 }
 0x47c   : > { %3066 = vpow2.f32 %v1957_v0 }
 0x485   : > { %v3065_v1 = vpop.eup %3064 }
 0x486   : > { %v1959_v3 = vadd.f32 1.0, %v3065_v1  ;;  %v1962_v2 = vmul.f32 -0.5, %v3065_v1  ;;  %v1965_v8 = vand.u32 2147483647, %v3065_v1 }
 0x488   : > { %3068 = vlog2.f32 %v1959_v3  ;;  %v1963_v6 = vadd.f32 1.0, %v1962_v2  ;;  %vm1966_vm12 = vcmp.lt.f32.partialorder %v1965_v8, 0.0004427343 }
 0x489   : > { %v3067_v4 = vpop.eup %3066 }
 0x48a   : > { %v1968_v5 = vadd.f32 1.0, %v3067_v4  ;;  %v1971_v7 = vmul.f32 -0.5, %v3067_v4  ;;  %v1964_v11 = vmul.f32 %v3065_v1, %v1963_v6  ;;  %v1974_v13 = vand.u32 2147483647, %v3067_v4 }
 0x48c   : > { %3070 = vlog2.f32 %v1968_v5  ;;  %v1972_v12 = vadd.f32 1.0, %v1971_v7  ;;  %vm1975_vm15 = vcmp.lt.f32.partialorder %v1974_v13, 0.0004427343 }
 0x48e   : > { %v1973_v18 = vmul.f32 %v3067_v4, %v1972_v12 }
 0x495   : > { %v3069_v9 = vpop.eup %3068 }
 0x496   : > { %v1961_v10 = vmul.f32 0.6931472, %v3069_v9 }
 0x498   : > { %v1967_v14 = vsel %vm1966_vm12, %v1964_v11, %v1961_v10 }
 0x499   : > { %v3071_v15 = vpop.eup %3070  ;;  %v1977_v16 = vmul.f32 0.1, %v1967_v14 }
 0x49a   : > { %v1970_v17 = vmul.f32 0.6931472, %v3071_v15 }
 0x49b   : > { %v1981_v19 = vsel %vm1979_vm13, %v1944_v55, %v1977_v16 }
 0x49c   : > { %v2612_v20 = vpack.c.bf16 %v1981_v19, %v1981_v19  ;;  %v1976_v21 = vsel %vm1975_vm15, %v1973_v18, %v1970_v17 }
 0x49d   : > { %v1978_v22 = vmul.f32 0.1, %v1976_v21 }
 0x49e   : > { %1992 = vst.msk [vmem:[%s3943_s11] sm:$0xf] %vm1991_vm14, %v2612_v20 }
 0x49f   : > { %v1982_v23 = vsel %vm1980_vm0, %v1947_v59, %v1978_v22 }
 0x4a0   : > { %v1983_v24 = vpack.c.bf16 %v1982_v23, %v1981_v19  ;;  %v2613_v25 = vpack.c.bf16 %v1982_v23, %v1982_v23 }
 0x4a2   : > { %1993 = vst.msk [vmem:[%s3943_s11 + $0x4] sm:$0xf] %vm1991_vm14, %v2613_v25  ;;  %2697 = vmatmul.mubr.bf16.vlgmr.msra.gmra.mxu0 %v1983_v24 }
 0x4a3   : > { %3163 = shalt.err (!%p3160_p0)
}
 0x4a4   : > { %s3164_s0 = scalar_lea.hbm %s3952_s15, 256  ;;  %s3168_s22 = scalar_lea.hbm %s4114_s7, 1024 }
 0x4a5   : > { %p3165_p1 = scmp.ne.s32.totalorder %s3952_s15, %s3164_s0  ;;  %p3169_p4 = scmp.lt.s32.totalorder %s3952_s15, %s4114_s7 }
 0x4a6   : > { %p3170_p9 = scmp.lt.s32.totalorder %s3168_s22, %s3164_s0 }
 0x4a7   : > { %p3166_p2 = pnand %p3165_p1, %p3419_p5 }
 0x4a8   : > { %p3171_p10 = por %p3170_p9, %p3169_p4 }
 0x4a9   : > { %p3167_p3 = pneg %p3166_p2 }
 0x4ab   : > { %p3172_p12 = pnand %p3171_p10, %p3167_p3 }
 0x4ad   : > { %3175 = shalt.err (!%p3172_p12)
}
 0x4ae   : > { %s4121_s3 = smov 128   ;;  %s4122_s26 = smov 8  }
 0x4af   : > { %2714 = dma.vmem_to_hbm [thread:$0]  (%p3419_p5), %s3955_s18, 256, %s3952_s15, %s3962_s2, %s4121_s3, %s4121_s3, %s4122_s26  }
 0x4b0   : > { %s2137_s4 = sshll.u32 %s3838_s12, 4  ;;  %s4120_s20 = sshll.u32 %s3400_s17, 7  ;;  %s3990_s4 = int_to_ptr.vmem [resolvable:$true] %s2137_s4 }
 0x4b1   : > { %s3997_s21 = scalar_lea.hbm %s4115_s8, %s4120_s20  ;;  %s2103_s22 = scalar_lea.sflag [#allocation4], %s3826_s25 }
 0x4b2   : > { %s3176_s30 = scalar_lea.vmem %s3990_s4, 256  ;;  %s3319_s15 = smov [#allocation8]  }
 0x4b3   : > { %p3177_p13 = scmp.ne.s32.totalorder %s3990_s4, %s3176_s30  ;;  %s3180_s12 = sshll.u32 %s3319_s15, 4  ;;  %s3181_s12 = int_to_ptr.vmem [resolvable:$false] %s3180_s12 }
 0x4b4   : > { %s3182_s18 = scalar_lea.vmem %s3181_s12, 512  ;;  %p3183_p11 = scmp.lt.s32.totalorder %s3990_s4, %s3181_s12 }
 0x4b5   : > { %p3178_p7 = pnand %p3177_p13, %p3419_p5  ;;  %p3184_p0 = scmp.lt.s32.totalorder %s3182_s18, %s3176_s30 }
 0x4b7   : > { %p3179_p8 = pneg %p3178_p7  ;;  %p3185_p1 = por %p3184_p0, %p3183_p11 }
 0x4b9   : > { %p3186_p2 = pnand %p3185_p1, %p3179_p8 }
 0x4bb   : > { %3189 = shalt.err (!%p3186_p2)
}
 0x4bc   : > { %s3190_s0 = scalar_lea.hbm %s3960_s1, 256  ;;  %s3194_s15 = scalar_lea.hbm %s4113_s6, 1024 }
 0x4bd   : > { %p3191_p3 = scmp.ne.s32.totalorder %s3960_s1, %s3190_s0  ;;  %p3195_p10 = scmp.lt.s32.totalorder %s3960_s1, %s4113_s6 }
 0x4be   : > { %p3196_p12 = scmp.lt.s32.totalorder %s3194_s15, %s3190_s0 }
 0x4bf   : > { %p3192_p4 = pnand %p3191_p3, %p3419_p5 }
 0x4c0   : > { %p3197_p13 = por %p3196_p12, %p3195_p10 }
 0x4c1   : > { %p3193_p9 = pneg %p3192_p4 }
 0x4c3   : > { %p3198_p7 = pnand %p3197_p13, %p3193_p9 }
 0x4c5   : > { %3201 = shalt.err (!%p3198_p7)
}
 0x4c6   : > { %s4141_s30 = smov 8   ;;  %s4142_s12 = smov 128  }
 0x4c7   : > { %2713 = dma.vmem_to_hbm [thread:$0]  (%p3419_p5), %s3990_s4, 256, %s3960_s1, %s2103_s22, %s4142_s12, %s4142_s12, %s4141_s30  }
 0x4c8   : > { %s2170_s20 = sshll.u32 %s3930_s28, 4  ;;  %s3320_s26 = smov [#allocation11]   ;;  %s4024_s20 = int_to_ptr.vmem [resolvable:$true] %s2170_s20 }
 0x4c9   : > { %s3202_s3 = scalar_lea.vmem %s4024_s20, 128  ;;  %s3206_s18 = sshll.u32 %s3320_s26, 4  ;;  %s3207_s18 = int_to_ptr.vmem [resolvable:$false] %s3206_s18 }
 0x4ca   : > { %p3203_p8 = scmp.ne.s32.totalorder %s4024_s20, %s3202_s3  ;;  %s3208_s0 = scalar_lea.vmem %s3207_s18, 256 }
 0x4cb   : > { %p3209_p1 = scmp.lt.s32.totalorder %s4024_s20, %s3207_s18  ;;  %p3210_p2 = scmp.lt.s32.totalorder %s3208_s0, %s3202_s3 }
 0x4cc   : > { %p3204_p11 = pnand %p3203_p8, %p3419_p5 }
 0x4cd   : > { %p3211_p3 = por %p3210_p2, %p3209_p1 }
 0x4ce   : > { %p3205_p0 = pneg %p3204_p11 }
 0x4d0   : > { %p3212_p4 = pnand %p3211_p3, %p3205_p0 }
 0x4d2   : > { %3215 = shalt.err (!%p3212_p4)
}
 0x4d3   : > { %s3216_s1 = scalar_lea.hbm %s3997_s21, 128  ;;  %s3220_s22 = scalar_lea.hbm %s4115_s8, 512 }
 0x4d4   : > { %p3217_p9 = scmp.ne.s32.totalorder %s3997_s21, %s3216_s1  ;;  %p3221_p13 = scmp.lt.s32.totalorder %s3997_s21, %s4115_s8 }
 0x4d5   : > { %p3222_p7 = scmp.lt.s32.totalorder %s3220_s22, %s3216_s1 }
 0x4d6   : > { %p3218_p10 = pnand %p3217_p9, %p3419_p5 }
 0x4d7   : > { %p3223_p8 = por %p3222_p7, %p3221_p13 }
 0x4d8   : > { %p3219_p12 = pneg %p3218_p10 }
 0x4da   : > { %p3224_p11 = pnand %p3223_p8, %p3219_p12 }
 0x4dc   : > { %3227 = shalt.err (!%p3224_p11)
}
 0x4dd   : > { %s3321_s30 = smov 64   ;;  %s3322_s12 = smov 4  }
 0x4de   : > { %2715 = dma.vmem_to_hbm [thread:$0]  (%p3419_p5), %s4024_s20, 128, %s3997_s21, %s3962_s2, %s3321_s30, %s3321_s30, %s3322_s12  }
 0x4df   : > { %s4143_s3 = sshll.u32 %s3400_s17, 7  ;;  %s2186_s1 = sshll.u32 %s3943_s11, 4  ;;  %s4058_s1 = int_to_ptr.vmem [resolvable:$true] %s2186_s1 }
 0x4e0   : > { %s4055_s0 = scalar_lea.hbm %s4116_s9, %s4143_s3  ;;  %s2118_s28 = scalar_lea.sflag [#allocation13], %s3826_s25 }
 0x4e1   : > { %s3228_s4 = scalar_lea.vmem %s4058_s1, 128  ;;  %s3323_s22 = smov [#allocation12]  }
 0x4e2   : > { %p3229_p0 = scmp.ne.s32.totalorder %s4058_s1, %s3228_s4  ;;  %s3232_s2 = sshll.u32 %s3323_s22, 4  ;;  %s3233_s2 = int_to_ptr.vmem [resolvable:$false] %s3232_s2 }
 0x4e3   : > { %s3234_s17 = scalar_lea.vmem %s3233_s2, 256  ;;  %p3235_p3 = scmp.lt.s32.totalorder %s4058_s1, %s3233_s2 }
 0x4e4   : > { %p3230_p1 = pnand %p3229_p0, %p3419_p5  ;;  %p3236_p4 = scmp.lt.s32.totalorder %s3234_s17, %s3228_s4 }
 0x4e6   : > { %p3231_p2 = pneg %p3230_p1  ;;  %p3237_p9 = por %p3236_p4, %p3235_p3 }
 0x4e8   : > { %p3238_p10 = pnand %p3237_p9, %p3231_p2 }
 0x4ea   : > { %3241 = shalt.err (!%p3238_p10)
}
 0x4eb   : > { %s3242_s11 = scalar_lea.hbm %s4055_s0, 128  ;;  %s3246_s20 = scalar_lea.hbm %s4116_s9, 512 }
 0x4ec   : > { %p3243_p12 = scmp.ne.s32.totalorder %s4055_s0, %s3242_s11  ;;  %p3247_p8 = scmp.lt.s32.totalorder %s4055_s0, %s4116_s9 }
 0x4ed   : > { %p3248_p11 = scmp.lt.s32.totalorder %s3246_s20, %s3242_s11 }
 0x4ee   : > { %p3244_p13 = pnand %p3243_p12, %p3419_p5 }
 0x4ef   : > { %p3249_p0 = por %p3248_p11, %p3247_p8 }
 0x4f0   : > { %p3245_p7 = pneg %p3244_p13 }
 0x4f2   : > { %p3250_p1 = pnand %p3249_p0, %p3245_p7 }
 0x4f4   : > { %3253 = shalt.err (!%p3250_p1)
}
 0x4f5   : > { %2716 = dma.vmem_to_hbm [thread:$0]  (%p3419_p5), %s4058_s1, 128, %s4055_s0, %s2118_s28, %s3321_s30, %s3321_s30, %s3322_s12   ;;  %vm2099_vm1 = vcmask 384000  }
 0x4f6   : > { %s2418_s3 = sshll.u32 %s4151_s29, 3 }
 0x4f7   : > { %s450_s4 = scalar_lea.vmem %s4117_s10, %s2418_s3 }
 0x562   : > { %v2092_v26 = vpop.f32.mrf.mxu0 }
 0x563   : > { %2100 = vst.msk [vmem:[%s450_s4] sm:$0xff] %vm2099_vm1, %v2092_v26 }
 0x564   : > { %v2698_v27 = vpop.f32.mrf.mxu0 }
 0x566   : > { %v2095_v28 = vpop.f32.mrf.mxu0 }
 0x567   : > { %2101 = vst.msk [vmem:[%s450_s4 + $0x8] sm:$0xff] %vm2099_vm1, %v2095_v28 }
 0x568   : > { %v2699_v29 = vpop.f32.mrf.mxu0 }
 0x569 PF: > { %p2750_p2 = scmp.ge.s32.totalorder %s3304_s16, 2  ;;  %s2205_s23 = sand.u32 1, %s3292_s13  }
 0x56a   : > { %s2206_s29 = scalar_lea.sflag [#allocation4], %s2205_s23 }
 0x56b   : > { %p2732_p5 = pnand %p2750_p2, %p3423_p6 }
 0x56d   : > { %p2733_p3 = pneg %p2732_p5 }
 0x56f   : > { %3279 = dma.done.wait (%p2733_p3), %s2206_s29, 256  }
 0x570   : > { %3281 = vsyncadd (%p2733_p3), %s2206_s29, 4294967040  ;;  %s4144_s30 = sadd.s32 4294967294, %s3304_s16  }
 0x571   : > { %s2214_s12 = sand.u32 1, %s4144_s30  }
 0x572   : > { %s2215_s0 = scalar_lea.sflag [#allocation10], %s2214_s12 }
 0x573   : > { %3283 = dma.done.wait (%p2733_p3), %s2215_s0, 384  }
 0x574   : > { %3285 = vsyncadd (%p2733_p3), %s2215_s0, 4294966912  ;;  %s2233_s1 = scalar_lea.sflag [#allocation13], %s2205_s23 }
 0x575   : > { %3287 = dma.done.wait (%p2733_p3), %s2233_s1, 128  }
 0x576   : > { %3289 = vsyncadd (%p2733_p3), %s2233_s1, 4294967168  ;;  %s4145_s28 = sld [smem:[#allocation19_spill]]  ;;  %p29_p4 = scmp.ge.s32.totalorder %s3404_s19, 6  }
 0x577   : > { %s4146_s15 = sld [smem:[#allocation20_spill]]  ;;  %s4147_s13 = smov %s3296_s14 }
 0x578   : > { %s4149_s16 = smov %s3404_s19  ;;  %31 = sbr.rel (!%p29_p4) target bundleno = 15 (0xf), region = 153 }
 0x57c   : > { %s4148_s14 = smov %s4145_s28 }
 0x57d   :  { %2246 = vsyncpa [#allocation3], 1 }
 0x57e   :  { %2248 = vsyncpa [#allocation3 + $0x1], 1 }
 0x57f   :  { %2249 = vsyncpa [#allocation6], 1 }
 0x580   :  { %2250 = vsyncpa [#allocation4], 1 }
 0x581   :  { %2252 = vsyncpa [#allocation4 + $0x1], 1 }
 0x582   :  { %2253 = vsyncpa [#allocation10], 1 }
 0x583   :  { %2255 = vsyncpa [#allocation10 + $0x1], 1 }
 0x584   :  { %2256 = vsyncpa [#allocation13], 1 }
 0x585   :  { %2258 = vsyncpa [#allocation13 + $0x1], 1 }

</bundles_post_ra>
